<compile_context>
chip_gen: v7x
topology: tpu7x:2x2x1
jax: 0.10.0
libtpu: 0.0.40
codegen_flags: <defaults>
</compile_context>

<pallas_src>
import jax
import jax.numpy as jnp
from jax import lax
from jax.experimental import pallas as pl
from jax.experimental.pallas import tpu as pltpu
import numpy as np

EPS = 1e-5


def _nores_block_kernel(x_ref, w1_ref, w2_ref, g1_ref, b1_ref, g2_ref, b2_ref,
                        sel_ref, selT_ref, out_ref, pad_ref):
    # x_ref   : (N, H+2, W*Cin)  H-padded input, (w, c) collapsed on lanes
    # w1_ref  : (3, W*Cin, W*P)  conv1 banded weights (one matrix per ky)
    # w2_ref  : (3, W*P,  W*P)   conv2 banded weights
    # g*/b*   : (1, P)           BN affine params
    # sel_ref : (W*P, P)         0/1 selector: lane (w*P+p) -> channel p
    # selT_ref: (P, W*P)         transpose (channel -> lane broadcast)
    # out_ref : (N, H, W*P)      output (also used as storage for raw conv results)
    # pad_ref : (H+2, W*P)       per-image row-padded conv2 input scratch
    N, Hp, _ = x_ref.shape
    H = Hp - 2
    WP = out_ref.shape[-1]
    P = g1_ref.shape[-1]
    cnt = jnp.float32(N * H * (WP // P))

    # Zero the small per-image scratch once; the interior rows are overwritten
    # every image, the two border rows stay zero (H-direction zero padding).
    pad_ref[...] = jnp.zeros(pad_ref.shape, pad_ref.dtype)

    zero = jnp.zeros((1, WP), jnp.float32)

    # ---- pass 1: conv1 (3 banded matmuls / image), raw result -> out_ref,
    #      accumulate lane-wise sum / sum-of-squares for BN1 batch stats.
    def conv1_body(n, carry):
        s, ss = carry
        xn = x_ref[n]                                            # (H+2, W*Cin)
        acc = jnp.dot(xn[0:H], w1_ref[0], preferred_element_type=jnp.float32)
        acc = acc + jnp.dot(xn[1:H + 1], w1_ref[1],
                            preferred_element_type=jnp.float32)
        acc = acc + jnp.dot(xn[2:H + 2], w1_ref[2],
                            preferred_element_type=jnp.float32)  # (H, W*P)
        out_ref[n] = acc
        s = s + jnp.sum(acc, axis=0, keepdims=True)
        ss = ss + jnp.sum(acc * acc, axis=0, keepdims=True)
        return s, ss

    s1, ss1 = lax.fori_loop(0, N, conv1_body, (zero, zero), unroll=True)

    # per-channel stats via selector matmuls (no lane<->sublane reshapes)
    ch_s1 = jnp.dot(s1, sel_ref[...], preferred_element_type=jnp.float32)
    ch_ss1 = jnp.dot(ss1, sel_ref[...], preferred_element_type=jnp.float32)
    m1 = ch_s1 / cnt
    v1 = ch_ss1 / cnt - m1 * m1
    scale1 = g1_ref[...] * lax.rsqrt(v1 + EPS)                   # (1, P)
    shift1 = b1_ref[...] - m1 * scale1
    scale1_l = jnp.dot(scale1, selT_ref[...], preferred_element_type=jnp.float32)
    shift1_l = jnp.dot(shift1, selT_ref[...], preferred_element_type=jnp.float32)

    # ---- pass 2: per image: BN1+ReLU (one FMA), conv2 (3 banded matmuls),
    #      raw conv2 result overwrites out_ref, accumulate BN2 stats.
    def conv2_body(n, carry):
        s, ss = carry
        c1 = out_ref[n]                                          # (H, W*P)
        y1 = jnp.maximum(c1 * scale1_l + shift1_l, 0.0)
        pad_ref[1:H + 1, :] = y1.astype(pad_ref.dtype)           # full-lane rows
        acc = jnp.dot(pad_ref[0:H, :], w2_ref[0],
                      preferred_element_type=jnp.float32)
        acc = acc + jnp.dot(pad_ref[1:H + 1, :], w2_ref[1],
                            preferred_element_type=jnp.float32)
        acc = acc + jnp.dot(pad_ref[2:H + 2, :], w2_ref[2],
                            preferred_element_type=jnp.float32)
        out_ref[n] = acc
        s = s + jnp.sum(acc, axis=0, keepdims=True)
        ss = ss + jnp.sum(acc * acc, axis=0, keepdims=True)
        return s, ss

    s2, ss2 = lax.fori_loop(0, N, conv2_body, (zero, zero), unroll=True)

    ch_s2 = jnp.dot(s2, sel_ref[...], preferred_element_type=jnp.float32)
    ch_ss2 = jnp.dot(ss2, sel_ref[...], preferred_element_type=jnp.float32)
    m2 = ch_s2 / cnt
    v2 = ch_ss2 / cnt - m2 * m2
    scale2 = g2_ref[...] * lax.rsqrt(v2 + EPS)
    shift2 = b2_ref[...] - m2 * scale2
    scale2_l = jnp.dot(scale2, selT_ref[...], preferred_element_type=jnp.float32)
    shift2_l = jnp.dot(shift2, selT_ref[...], preferred_element_type=jnp.float32)

    # ---- pass 3: BN2 + ReLU in place (lane-dense full-width stores).
    out_ref[...] = jnp.maximum(out_ref[...] * scale2_l + shift2_l, 0.0)


def _banded_weights(w_oihw, width):
    """(P, C, 3, 3) OIHW conv weights -> (3, width*C, width*P) banded matrices.

    M[ky][w_in*C + c, w*P + p] = w[p, c, ky, w_in - w + 1] when the tap is in
    range, else 0 — a 3x3 'same' conv along W becomes one dense matmul per ky
    with the W-direction zero padding folded into the band structure.
    """
    P, C, _, KW = w_oihw.shape
    w_hwio = jnp.transpose(w_oihw, (2, 3, 1, 0)).astype(jnp.float32)  # (3,3,C,P)
    wi = jnp.arange(width)
    kx = wi[:, None] - wi[None, :] + 1                      # (w_in, w)
    valid = ((kx >= 0) & (kx < KW)).astype(jnp.float32)[..., None, None]
    kxc = jnp.clip(kx, 0, KW - 1)
    mats = []
    for ky in range(3):
        blocks = w_hwio[ky][kxc] * valid                    # (W, W, C, P)
        mats.append(jnp.transpose(blocks, (0, 2, 1, 3)).reshape(width * C,
                                                                width * P))
    return jnp.stack(mats, axis=0)


def nores_basic_block(x_nchw, w1_oihw, w2_oihw, g1, b1, g2, b2, *,
                      use_bf16=False):
    """Forward of noresBasicBlock. Accepts/returns NCHW (PyTorch convention).

    use_bf16=True feeds the MXU bf16 activations/weights (f32 accumulate); it is
    off by default to keep exact parity with the f32 PyTorch/JAX reference.
    """
    N, Cin, H, W = x_nchw.shape
    P = w1_oihw.shape[0]
    WP = W * P
    compute_dtype = jnp.bfloat16 if use_bf16 else jnp.float32

    # NCHW -> NHWC, pad only the H dimension (W padding lives in the banded
    # weights), collapse (W, Cin) onto the lane axis.
    x_nhwc = jnp.transpose(x_nchw, (0, 2, 3, 1)).astype(jnp.float32)
    xh = jnp.pad(x_nhwc, ((0, 0), (1, 1), (0, 0), (0, 0)))
    xf = xh.reshape(N, H + 2, W * Cin).astype(compute_dtype)

    w1b = _banded_weights(w1_oihw, W).astype(compute_dtype)   # (3, W*Cin, W*P)
    w2b = _banded_weights(w2_oihw, W).astype(compute_dtype)   # (3, W*P,  W*P)

    lane_ch = jnp.arange(WP) % P
    sel = (lane_ch[:, None] == jnp.arange(P)[None, :]).astype(jnp.float32)
    selT = jnp.transpose(sel)

    out_flat = pl.pallas_call(
        _nores_block_kernel,
        out_shape=jax.ShapeDtypeStruct((N, H, WP), jnp.float32),
        in_specs=[pl.BlockSpec(memory_space=pltpu.MemorySpace.VMEM)] * 9,
        out_specs=pl.BlockSpec(memory_space=pltpu.MemorySpace.VMEM),
        scratch_shapes=[pltpu.VMEM((H + 2, WP), compute_dtype)],
    )(xf, w1b, w2b,
      g1.reshape(1, P).astype(jnp.float32), b1.reshape(1, P).astype(jnp.float32),
      g2.reshape(1, P).astype(jnp.float32), b2.reshape(1, P).astype(jnp.float32),
      sel, selT)

    out_nhwc = out_flat.reshape(N, H, W, P)
    return jnp.transpose(out_nhwc, (0, 3, 1, 2))


def _reference_forward(x_nchw, w1, w2, g1, b1, g2, b2):
    """Pure-JAX reference (matches PyTorch training-mode BN semantics)."""
    def conv(x, w):
        return jax.lax.conv_general_dilated(
            x, w, window_strides=(1, 1), padding=((1, 1), (1, 1)),
            dimension_numbers=('NCHW', 'OIHW', 'NCHW'))

    def bn(x, g, b):
        m = x.mean(axis=(0, 2, 3), keepdims=True)
        v = ((x - m) ** 2).mean(axis=(0, 2, 3), keepdims=True)
        return ((x - m) * jax.lax.rsqrt(v + EPS)
                * g[None, :, None, None] + b[None, :, None, None])

    o = jnp.maximum(bn(conv(x_nchw, w1), g1, b1), 0.0)
    o = jnp.maximum(bn(conv(o, w2), g2, b2), 0.0)
    return o


if __name__ == "__main__":
    # Small shapes consistent with the module: N=2, inplanes=4, planes=8, 16x16.
    N, Cin, H, W = 2, 4, 16, 16
    P = 8  # planes

    key = jax.random.PRNGKey(0)
    kx, kw1, kw2, kg1, kb1, kg2, kb2 = jax.random.split(key, 7)

    x = jax.random.normal(kx, (N, Cin, H, W), jnp.float32)
    w1 = jax.random.normal(kw1, (P, Cin, 3, 3), jnp.float32) * 0.1   # conv1 (OIHW)
    w2 = jax.random.normal(kw2, (P, P, 3, 3), jnp.float32) * 0.1     # conv2 (OIHW)
    g1 = 1.0 + 0.1 * jax.random.normal(kg1, (P,), jnp.float32)       # bn1 gamma
    b1 = 0.1 * jax.random.normal(kb1, (P,), jnp.float32)             # bn1 beta
    g2 = 1.0 + 0.1 * jax.random.normal(kg2, (P,), jnp.float32)       # bn2 gamma
    b2 = 0.1 * jax.random.normal(kb2, (P,), jnp.float32)             # bn2 beta

    out = nores_basic_block(x, w1, w2, g1, b1, g2, b2)
    out = jax.block_until_ready(out)

    ref = _reference_forward(x, w1, w2, g1, b1, g2, b2)
    assert out.shape == (N, P, H, W)
    np.testing.assert_allclose(np.asarray(out), np.asarray(ref),
                               atol=1e-4, rtol=1e-4)
    print("KERNEL_OK")
</pallas_src>

<mosaic_0001>
module attributes {stable_mosaic.version = 11 : i64} {
  func.func @_nores_block_kernel(%arg0: memref<2x18x64xf32, #tpu.memory_space<vmem>>, %arg1: memref<3x64x128xf32, #tpu.memory_space<vmem>>, %arg2: memref<3x128x128xf32, #tpu.memory_space<vmem>>, %arg3: memref<1x8xf32, #tpu.memory_space<vmem>>, %arg4: memref<1x8xf32, #tpu.memory_space<vmem>>, %arg5: memref<1x8xf32, #tpu.memory_space<vmem>>, %arg6: memref<1x8xf32, #tpu.memory_space<vmem>>, %arg7: memref<128x8xf32, #tpu.memory_space<vmem>>, %arg8: memref<8x128xf32, #tpu.memory_space<vmem>>, %arg9: memref<2x16x128xf32, #tpu.memory_space<vmem>>, %arg10: memref<18x128xf32, #tpu.memory_space<vmem>>) attributes {dimension_semantics = [], scalar_prefetch = 0 : i64, scratch_operands = 1 : i64, tpu.core_type = #tpu.core_type<tc>} {
    %cst = arith.constant 0.000000e+00 : f32
    %0 = vector.broadcast %cst : f32 to vector<18x128xf32>
    %c0 = arith.constant 0 : index
    %c0_0 = arith.constant 0 : index
    %1 = vector.load %arg10[%c0, %c0_0] : memref<18x128xf32, #tpu.memory_space<vmem>>, vector<18x128xf32>
    tpu.vector_store %arg10[%c0, %c0_0], %0 {strides = array<i32>} : memref<18x128xf32, #tpu.memory_space<vmem>>, vector<18x128xf32>,
    %cst_1 = arith.constant 0.000000e+00 : f32
    %2 = vector.broadcast %cst_1 : f32 to vector<1x128xf32>
    %c0_i32 = arith.constant 0 : i32
    %3 = arith.index_cast %c0_i32 : i32 to index
    %c0_2 = arith.constant 0 : index
    %c0_3 = arith.constant 0 : index
    %4 = vector.load %arg0[%3, %c0_2, %c0_3] : memref<2x18x64xf32, #tpu.memory_space<vmem>>, vector<1x18x64xf32>
    %5 = vector.shape_cast %4 : vector<1x18x64xf32> to vector<18x64xf32>
    %6 = vector.extract_strided_slice %5 {offsets = [0, 0], sizes = [16, 64], strides = [1, 1]} : vector<18x64xf32> to vector<16x64xf32>
    %c0_4 = arith.constant 0 : index
    %c0_5 = arith.constant 0 : index
    %c0_6 = arith.constant 0 : index
    %7 = vector.load %arg1[%c0_4, %c0_5, %c0_6] : memref<3x64x128xf32, #tpu.memory_space<vmem>>, vector<1x64x128xf32>
    %8 = vector.shape_cast %7 : vector<1x64x128xf32> to vector<64x128xf32>
    %cst_7 = arith.constant dense<0.000000e+00> : vector<16x128xf32>
    %9 = tpu.matmul %6, %8, %cst_7 {dimension_numbers = #tpu.dot_dimension_numbers<[1], [0], [0], [1], [0, 0, 1, 1], [], []>} : vector<16x64xf32>, vector<64x128xf32>, vector<16x128xf32> -> vector<16x128xf32>
    %10 = vector.extract_strided_slice %5 {offsets = [1, 0], sizes = [16, 64], strides = [1, 1]} : vector<18x64xf32> to vector<16x64xf32>
    %c1 = arith.constant 1 : index
    %c0_8 = arith.constant 0 : index
    %c0_9 = arith.constant 0 : index
    %11 = vector.load %arg1[%c1, %c0_8, %c0_9] : memref<3x64x128xf32, #tpu.memory_space<vmem>>, vector<1x64x128xf32>
    %12 = vector.shape_cast %11 : vector<1x64x128xf32> to vector<64x128xf32>
    %cst_10 = arith.constant dense<0.000000e+00> : vector<16x128xf32>
    %13 = tpu.matmul %10, %12, %cst_10 {dimension_numbers = #tpu.dot_dimension_numbers<[1], [0], [0], [1], [0, 0, 1, 1], [], []>} : vector<16x64xf32>, vector<64x128xf32>, vector<16x128xf32> -> vector<16x128xf32>
    %14 = arith.addf %9, %13 : vector<16x128xf32>
    %15 = vector.extract_strided_slice %5 {offsets = [2, 0], sizes = [16, 64], strides = [1, 1]} : vector<18x64xf32> to vector<16x64xf32>
    %c2 = arith.constant 2 : index
    %c0_11 = arith.constant 0 : index
    %c0_12 = arith.constant 0 : index
    %16 = vector.load %arg1[%c2, %c0_11, %c0_12] : memref<3x64x128xf32, #tpu.memory_space<vmem>>, vector<1x64x128xf32>
    %17 = vector.shape_cast %16 : vector<1x64x128xf32> to vector<64x128xf32>
    %cst_13 = arith.constant dense<0.000000e+00> : vector<16x128xf32>
    %18 = tpu.matmul %15, %17, %cst_13 {dimension_numbers = #tpu.dot_dimension_numbers<[1], [0], [0], [1], [0, 0, 1, 1], [], []>} : vector<16x64xf32>, vector<64x128xf32>, vector<16x128xf32> -> vector<16x128xf32>
    %19 = arith.addf %14, %18 : vector<16x128xf32>
    %20 = arith.index_cast %c0_i32 : i32 to index
    %c0_14 = arith.constant 0 : index
    %c0_15 = arith.constant 0 : index
    %21 = vector.load %arg9[%20, %c0_14, %c0_15] : memref<2x16x128xf32, #tpu.memory_space<vmem>>, vector<1x16x128xf32>
    %22 = vector.shape_cast %21 : vector<1x16x128xf32> to vector<16x128xf32>
    %23 = vector.shape_cast %19 : vector<16x128xf32> to vector<1x16x128xf32>
    tpu.vector_store %arg9[%20, %c0_14, %c0_15], %23 {strides = array<i32>} : memref<2x16x128xf32, #tpu.memory_space<vmem>>, vector<1x16x128xf32>,
    %cst_16 = arith.constant dense<0.000000e+00> : vector<128xf32>
    %24 = vector.multi_reduction <add>, %19, %cst_16 [0] : vector<16x128xf32> to vector<128xf32>
    %25 = vector.shape_cast %24 : vector<128xf32> to vector<1x128xf32>
    %26 = arith.addf %2, %25 : vector<1x128xf32>
    %27 = arith.mulf %19, %19 : vector<16x128xf32>
    %cst_17 = arith.constant dense<0.000000e+00> : vector<128xf32>
    %28 = vector.multi_reduction <add>, %27, %cst_17 [0] : vector<16x128xf32> to vector<128xf32>
    %29 = vector.shape_cast %28 : vector<128xf32> to vector<1x128xf32>
    %30 = arith.addf %2, %29 : vector<1x128xf32>
    %c1_i32 = arith.constant 1 : i32
    %31 = arith.index_cast %c1_i32 : i32 to index
    %c0_18 = arith.constant 0 : index
    %c0_19 = arith.constant 0 : index
    %32 = vector.load %arg0[%31, %c0_18, %c0_19] : memref<2x18x64xf32, #tpu.memory_space<vmem>>, vector<1x18x64xf32>
    %33 = vector.shape_cast %32 : vector<1x18x64xf32> to vector<18x64xf32>
    %34 = vector.extract_strided_slice %33 {offsets = [0, 0], sizes = [16, 64], strides = [1, 1]} : vector<18x64xf32> to vector<16x64xf32>
    %c0_20 = arith.constant 0 : index
    %c0_21 = arith.constant 0 : index
    %c0_22 = arith.constant 0 : index
    %35 = vector.load %arg1[%c0_20, %c0_21, %c0_22] : memref<3x64x128xf32, #tpu.memory_space<vmem>>, vector<1x64x128xf32>
    %36 = vector.shape_cast %35 : vector<1x64x128xf32> to vector<64x128xf32>
    %cst_23 = arith.constant dense<0.000000e+00> : vector<16x128xf32>
    %37 = tpu.matmul %34, %36, %cst_23 {dimension_numbers = #tpu.dot_dimension_numbers<[1], [0], [0], [1], [0, 0, 1, 1], [], []>} : vector<16x64xf32>, vector<64x128xf32>, vector<16x128xf32> -> vector<16x128xf32>
    %38 = vector.extract_strided_slice %33 {offsets = [1, 0], sizes = [16, 64], strides = [1, 1]} : vector<18x64xf32> to vector<16x64xf32>
    %c1_24 = arith.constant 1 : index
    %c0_25 = arith.constant 0 : index
    %c0_26 = arith.constant 0 : index
    %39 = vector.load %arg1[%c1_24, %c0_25, %c0_26] : memref<3x64x128xf32, #tpu.memory_space<vmem>>, vector<1x64x128xf32>
    %40 = vector.shape_cast %39 : vector<1x64x128xf32> to vector<64x128xf32>
    %cst_27 = arith.constant dense<0.000000e+00> : vector<16x128xf32>
    %41 = tpu.matmul %38, %40, %cst_27 {dimension_numbers = #tpu.dot_dimension_numbers<[1], [0], [0], [1], [0, 0, 1, 1], [], []>} : vector<16x64xf32>, vector<64x128xf32>, vector<16x128xf32> -> vector<16x128xf32>
    %42 = arith.addf %37, %41 : vector<16x128xf32>
    %43 = vector.extract_strided_slice %33 {offsets = [2, 0], sizes = [16, 64], strides = [1, 1]} : vector<18x64xf32> to vector<16x64xf32>
    %c2_28 = arith.constant 2 : index
    %c0_29 = arith.constant 0 : index
    %c0_30 = arith.constant 0 : index
    %44 = vector.load %arg1[%c2_28, %c0_29, %c0_30] : memref<3x64x128xf32, #tpu.memory_space<vmem>>, vector<1x64x128xf32>
    %45 = vector.shape_cast %44 : vector<1x64x128xf32> to vector<64x128xf32>
    %cst_31 = arith.constant dense<0.000000e+00> : vector<16x128xf32>
    %46 = tpu.matmul %43, %45, %cst_31 {dimension_numbers = #tpu.dot_dimension_numbers<[1], [0], [0], [1], [0, 0, 1, 1], [], []>} : vector<16x64xf32>, vector<64x128xf32>, vector<16x128xf32> -> vector<16x128xf32>
    %47 = arith.addf %42, %46 : vector<16x128xf32>
    %48 = arith.index_cast %c1_i32 : i32 to index
    %c0_32 = arith.constant 0 : index
    %c0_33 = arith.constant 0 : index
    %49 = vector.load %arg9[%48, %c0_32, %c0_33] : memref<2x16x128xf32, #tpu.memory_space<vmem>>, vector<1x16x128xf32>
    %50 = vector.shape_cast %49 : vector<1x16x128xf32> to vector<16x128xf32>
    %51 = vector.shape_cast %47 : vector<16x128xf32> to vector<1x16x128xf32>
    tpu.vector_store %arg9[%48, %c0_32, %c0_33], %51 {strides = array<i32>} : memref<2x16x128xf32, #tpu.memory_space<vmem>>, vector<1x16x128xf32>,
    %cst_34 = arith.constant dense<0.000000e+00> : vector<128xf32>
    %52 = vector.multi_reduction <add>, %47, %cst_34 [0] : vector<16x128xf32> to vector<128xf32>
    %53 = vector.shape_cast %52 : vector<128xf32> to vector<1x128xf32>
    %54 = arith.addf %26, %53 : vector<1x128xf32>
    %55 = arith.mulf %47, %47 : vector<16x128xf32>
    %cst_35 = arith.constant dense<0.000000e+00> : vector<128xf32>
    %56 = vector.multi_reduction <add>, %55, %cst_35 [0] : vector<16x128xf32> to vector<128xf32>
    %57 = vector.shape_cast %56 : vector<128xf32> to vector<1x128xf32>
    %58 = arith.addf %30, %57 : vector<1x128xf32>
    %c2_i32 = arith.constant 2 : i32
    %c0_36 = arith.constant 0 : index
    %c0_37 = arith.constant 0 : index
    %59 = vector.load %arg7[%c0_36, %c0_37] : memref<128x8xf32, #tpu.memory_space<vmem>>, vector<128x8xf32>
    %cst_38 = arith.constant dense<0.000000e+00> : vector<1x8xf32>
    %60 = tpu.matmul %54, %59, %cst_38 {dimension_numbers = #tpu.dot_dimension_numbers<[1], [0], [0], [1], [0, 0, 1, 1], [], []>} : vector<1x128xf32>, vector<128x8xf32>, vector<1x8xf32> -> vector<1x8xf32>
    %c0_39 = arith.constant 0 : index
    %c0_40 = arith.constant 0 : index
    %61 = vector.load %arg7[%c0_39, %c0_40] : memref<128x8xf32, #tpu.memory_space<vmem>>, vector<128x8xf32>
    %cst_41 = arith.constant dense<0.000000e+00> : vector<1x8xf32>
    %62 = tpu.matmul %58, %61, %cst_41 {dimension_numbers = #tpu.dot_dimension_numbers<[1], [0], [0], [1], [0, 0, 1, 1], [], []>} : vector<1x128xf32>, vector<128x8xf32>, vector<1x8xf32> -> vector<1x8xf32>
    %cst_42 = arith.constant 5.120000e+02 : f32
    %63 = vector.broadcast %cst_42 : f32 to vector<1x8xf32>
    %64 = arith.divf %60, %63 : vector<1x8xf32>
    %cst_43 = arith.constant 5.120000e+02 : f32
    %65 = vector.broadcast %cst_43 : f32 to vector<1x8xf32>
    %66 = arith.divf %62, %65 : vector<1x8xf32>
    %67 = arith.mulf %64, %64 : vector<1x8xf32>
    %68 = arith.subf %66, %67 : vector<1x8xf32>
    %c0_44 = arith.constant 0 : index
    %c0_45 = arith.constant 0 : index
    %69 = vector.load %arg3[%c0_44, %c0_45] : memref<1x8xf32, #tpu.memory_space<vmem>>, vector<1x8xf32>
    %cst_46 = arith.constant 9.99999974E-6 : f32
    %70 = vector.broadcast %cst_46 : f32 to vector<1x8xf32>
    %71 = arith.addf %68, %70 : vector<1x8xf32>
    %72 = math.rsqrt %71 : vector<1x8xf32>
    %73 = arith.mulf %69, %72 : vector<1x8xf32>
    %c0_47 = arith.constant 0 : index
    %c0_48 = arith.constant 0 : index
    %74 = vector.load %arg4[%c0_47, %c0_48] : memref<1x8xf32, #tpu.memory_space<vmem>>, vector<1x8xf32>
    %75 = arith.mulf %64, %73 : vector<1x8xf32>
    %76 = arith.subf %74, %75 : vector<1x8xf32>
    %c0_49 = arith.constant 0 : index
    %c0_50 = arith.constant 0 : index
    %77 = vector.load %arg8[%c0_49, %c0_50] : memref<8x128xf32, #tpu.memory_space<vmem>>, vector<8x128xf32>
    %cst_51 = arith.constant dense<0.000000e+00> : vector<1x128xf32>
    %78 = tpu.matmul %73, %77, %cst_51 {dimension_numbers = #tpu.dot_dimension_numbers<[1], [0], [0], [1], [0, 0, 1, 1], [], []>} : vector<1x8xf32>, vector<8x128xf32>, vector<1x128xf32> -> vector<1x128xf32>
    %c0_52 = arith.constant 0 : index
    %c0_53 = arith.constant 0 : index
    %79 = vector.load %arg8[%c0_52, %c0_53] : memref<8x128xf32, #tpu.memory_space<vmem>>, vector<8x128xf32>
    %cst_54 = arith.constant dense<0.000000e+00> : vector<1x128xf32>
    %80 = tpu.matmul %76, %79, %cst_54 {dimension_numbers = #tpu.dot_dimension_numbers<[1], [0], [0], [1], [0, 0, 1, 1], [], []>} : vector<1x8xf32>, vector<8x128xf32>, vector<1x128xf32> -> vector<1x128xf32>
    %c0_i32_55 = arith.constant 0 : i32
    %81 = arith.index_cast %c0_i32_55 : i32 to index
    %c0_56 = arith.constant 0 : index
    %c0_57 = arith.constant 0 : index
    %82 = vector.load %arg9[%81, %c0_56, %c0_57] : memref<2x16x128xf32, #tpu.memory_space<vmem>>, vector<1x16x128xf32>
    %83 = vector.shape_cast %82 : vector<1x16x128xf32> to vector<16x128xf32>
    %84 = vector.broadcast %78 : vector<1x128xf32> to vector<16x128xf32>
    %85 = arith.mulf %83, %84 : vector<16x128xf32>
    %86 = vector.broadcast %80 : vector<1x128xf32> to vector<16x128xf32>
    %87 = arith.addf %85, %86 : vector<16x128xf32>
    %cst_58 = arith.constant 0.000000e+00 : f32
    %88 = vector.broadcast %cst_58 : f32 to vector<16x128xf32>
    %89 = arith.maximumf %87, %88 : vector<16x128xf32>
    %c1_59 = arith.constant 1 : index
    %c0_60 = arith.constant 0 : index
    %90 = vector.load %arg10[%c1_59, %c0_60] : memref<18x128xf32, #tpu.memory_space<vmem>>, vector<16x128xf32>
    tpu.vector_store %arg10[%c1_59, %c0_60], %89 {strides = array<i32>} : memref<18x128xf32, #tpu.memory_space<vmem>>, vector<16x128xf32>,
    %c0_61 = arith.constant 0 : index
    %c0_62 = arith.constant 0 : index
    %91 = vector.load %arg10[%c0_61, %c0_62] : memref<18x128xf32, #tpu.memory_space<vmem>>, vector<16x128xf32>
    %c0_63 = arith.constant 0 : index
    %c0_64 = arith.constant 0 : index
    %c0_65 = arith.constant 0 : index
    %92 = vector.load %arg2[%c0_63, %c0_64, %c0_65] : memref<3x128x128xf32, #tpu.memory_space<vmem>>, vector<1x128x128xf32>
    %93 = vector.shape_cast %92 : vector<1x128x128xf32> to vector<128x128xf32>
    %cst_66 = arith.constant dense<0.000000e+00> : vector<16x128xf32>
    %94 = tpu.matmul %91, %93, %cst_66 {dimension_numbers = #tpu.dot_dimension_numbers<[1], [0], [0], [1], [0, 0, 1, 1], [], []>} : vector<16x128xf32>, vector<128x128xf32>, vector<16x128xf32> -> vector<16x128xf32>
    %c1_67 = arith.constant 1 : index
    %c0_68 = arith.constant 0 : index
    %95 = vector.load %arg10[%c1_67, %c0_68] : memref<18x128xf32, #tpu.memory_space<vmem>>, vector<16x128xf32>
    %c1_69 = arith.constant 1 : index
    %c0_70 = arith.constant 0 : index
    %c0_71 = arith.constant 0 : index
    %96 = vector.load %arg2[%c1_69, %c0_70, %c0_71] : memref<3x128x128xf32, #tpu.memory_space<vmem>>, vector<1x128x128xf32>
    %97 = vector.shape_cast %96 : vector<1x128x128xf32> to vector<128x128xf32>
    %cst_72 = arith.constant dense<0.000000e+00> : vector<16x128xf32>
    %98 = tpu.matmul %95, %97, %cst_72 {dimension_numbers = #tpu.dot_dimension_numbers<[1], [0], [0], [1], [0, 0, 1, 1], [], []>} : vector<16x128xf32>, vector<128x128xf32>, vector<16x128xf32> -> vector<16x128xf32>
    %99 = arith.addf %94, %98 : vector<16x128xf32>
    %c2_73 = arith.constant 2 : index
    %c0_74 = arith.constant 0 : index
    %100 = vector.load %arg10[%c2_73, %c0_74] : memref<18x128xf32, #tpu.memory_space<vmem>>, vector<16x128xf32>
    %c2_75 = arith.constant 2 : index
    %c0_76 = arith.constant 0 : index
    %c0_77 = arith.constant 0 : index
    %101 = vector.load %arg2[%c2_75, %c0_76, %c0_77] : memref<3x128x128xf32, #tpu.memory_space<vmem>>, vector<1x128x128xf32>
    %102 = vector.shape_cast %101 : vector<1x128x128xf32> to vector<128x128xf32>
    %cst_78 = arith.constant dense<0.000000e+00> : vector<16x128xf32>
    %103 = tpu.matmul %100, %102, %cst_78 {dimension_numbers = #tpu.dot_dimension_numbers<[1], [0], [0], [1], [0, 0, 1, 1], [], []>} : vector<16x128xf32>, vector<128x128xf32>, vector<16x128xf32> -> vector<16x128xf32>
    %104 = arith.addf %99, %103 : vector<16x128xf32>
    %105 = arith.index_cast %c0_i32_55 : i32 to index
    %c0_79 = arith.constant 0 : index
    %c0_80 = arith.constant 0 : index
    %106 = vector.load %arg9[%105, %c0_79, %c0_80] : memref<2x16x128xf32, #tpu.memory_space<vmem>>, vector<1x16x128xf32>
    %107 = vector.shape_cast %106 : vector<1x16x128xf32> to vector<16x128xf32>
    %108 = vector.shape_cast %104 : vector<16x128xf32> to vector<1x16x128xf32>
    tpu.vector_store %arg9[%105, %c0_79, %c0_80], %108 {strides = array<i32>} : memref<2x16x128xf32, #tpu.memory_space<vmem>>, vector<1x16x128xf32>,
    %cst_81 = arith.constant dense<0.000000e+00> : vector<128xf32>
    %109 = vector.multi_reduction <add>, %104, %cst_81 [0] : vector<16x128xf32> to vector<128xf32>
    %110 = vector.shape_cast %109 : vector<128xf32> to vector<1x128xf32>
    %111 = arith.addf %2, %110 : vector<1x128xf32>
    %112 = arith.mulf %104, %104 : vector<16x128xf32>
    %cst_82 = arith.constant dense<0.000000e+00> : vector<128xf32>
    %113 = vector.multi_reduction <add>, %112, %cst_82 [0] : vector<16x128xf32> to vector<128xf32>
    %114 = vector.shape_cast %113 : vector<128xf32> to vector<1x128xf32>
    %115 = arith.addf %2, %114 : vector<1x128xf32>
    %c1_i32_83 = arith.constant 1 : i32
    %116 = arith.index_cast %c1_i32_83 : i32 to index
    %c0_84 = arith.constant 0 : index
    %c0_85 = arith.constant 0 : index
    %117 = vector.load %arg9[%116, %c0_84, %c0_85] : memref<2x16x128xf32, #tpu.memory_space<vmem>>, vector<1x16x128xf32>
    %118 = vector.shape_cast %117 : vector<1x16x128xf32> to vector<16x128xf32>
    %119 = vector.broadcast %78 : vector<1x128xf32> to vector<16x128xf32>
    %120 = arith.mulf %118, %119 : vector<16x128xf32>
    %121 = vector.broadcast %80 : vector<1x128xf32> to vector<16x128xf32>
    %122 = arith.addf %120, %121 : vector<16x128xf32>
    %cst_86 = arith.constant 0.000000e+00 : f32
    %123 = vector.broadcast %cst_86 : f32 to vector<16x128xf32>
    %124 = arith.maximumf %122, %123 : vector<16x128xf32>
    %c1_87 = arith.constant 1 : index
    %c0_88 = arith.constant 0 : index
    %125 = vector.load %arg10[%c1_87, %c0_88] : memref<18x128xf32, #tpu.memory_space<vmem>>, vector<16x128xf32>
    tpu.vector_store %arg10[%c1_87, %c0_88], %124 {strides = array<i32>} : memref<18x128xf32, #tpu.memory_space<vmem>>, vector<16x128xf32>,
    %c0_89 = arith.constant 0 : index
    %c0_90 = arith.constant 0 : index
    %126 = vector.load %arg10[%c0_89, %c0_90] : memref<18x128xf32, #tpu.memory_space<vmem>>, vector<16x128xf32>
    %c0_91 = arith.constant 0 : index
    %c0_92 = arith.constant 0 : index
    %c0_93 = arith.constant 0 : index
    %127 = vector.load %arg2[%c0_91, %c0_92, %c0_93] : memref<3x128x128xf32, #tpu.memory_space<vmem>>, vector<1x128x128xf32>
    %128 = vector.shape_cast %127 : vector<1x128x128xf32> to vector<128x128xf32>
    %cst_94 = arith.constant dense<0.000000e+00> : vector<16x128xf32>
    %129 = tpu.matmul %126, %128, %cst_94 {dimension_numbers = #tpu.dot_dimension_numbers<[1], [0], [0], [1], [0, 0, 1, 1], [], []>} : vector<16x128xf32>, vector<128x128xf32>, vector<16x128xf32> -> vector<16x128xf32>
    %c1_95 = arith.constant 1 : index
    %c0_96 = arith.constant 0 : index
    %130 = vector.load %arg10[%c1_95, %c0_96] : memref<18x128xf32, #tpu.memory_space<vmem>>, vector<16x128xf32>
    %c1_97 = arith.constant 1 : index
    %c0_98 = arith.constant 0 : index
    %c0_99 = arith.constant 0 : index
    %131 = vector.load %arg2[%c1_97, %c0_98, %c0_99] : memref<3x128x128xf32, #tpu.memory_space<vmem>>, vector<1x128x128xf32>
    %132 = vector.shape_cast %131 : vector<1x128x128xf32> to vector<128x128xf32>
    %cst_100 = arith.constant dense<0.000000e+00> : vector<16x128xf32>
    %133 = tpu.matmul %130, %132, %cst_100 {dimension_numbers = #tpu.dot_dimension_numbers<[1], [0], [0], [1], [0, 0, 1, 1], [], []>} : vector<16x128xf32>, vector<128x128xf32>, vector<16x128xf32> -> vector<16x128xf32>
    %134 = arith.addf %129, %133 : vector<16x128xf32>
    %c2_101 = arith.constant 2 : index
    %c0_102 = arith.constant 0 : index
    %135 = vector.load %arg10[%c2_101, %c0_102] : memref<18x128xf32, #tpu.memory_space<vmem>>, vector<16x128xf32>
    %c2_103 = arith.constant 2 : index
    %c0_104 = arith.constant 0 : index
    %c0_105 = arith.constant 0 : index
    %136 = vector.load %arg2[%c2_103, %c0_104, %c0_105] : memref<3x128x128xf32, #tpu.memory_space<vmem>>, vector<1x128x128xf32>
    %137 = vector.shape_cast %136 : vector<1x128x128xf32> to vector<128x128xf32>
    %cst_106 = arith.constant dense<0.000000e+00> : vector<16x128xf32>
    %138 = tpu.matmul %135, %137, %cst_106 {dimension_numbers = #tpu.dot_dimension_numbers<[1], [0], [0], [1], [0, 0, 1, 1], [], []>} : vector<16x128xf32>, vector<128x128xf32>, vector<16x128xf32> -> vector<16x128xf32>
    %139 = arith.addf %134, %138 : vector<16x128xf32>
    %140 = arith.index_cast %c1_i32_83 : i32 to index
    %c0_107 = arith.constant 0 : index
    %c0_108 = arith.constant 0 : index
    %141 = vector.load %arg9[%140, %c0_107, %c0_108] : memref<2x16x128xf32, #tpu.memory_space<vmem>>, vector<1x16x128xf32>
    %142 = vector.shape_cast %141 : vector<1x16x128xf32> to vector<16x128xf32>
    %143 = vector.shape_cast %139 : vector<16x128xf32> to vector<1x16x128xf32>
    tpu.vector_store %arg9[%140, %c0_107, %c0_108], %143 {strides = array<i32>} : memref<2x16x128xf32, #tpu.memory_space<vmem>>, vector<1x16x128xf32>,
    %cst_109 = arith.constant dense<0.000000e+00> : vector<128xf32>
    %144 = vector.multi_reduction <add>, %139, %cst_109 [0] : vector<16x128xf32> to vector<128xf32>
    %145 = vector.shape_cast %144 : vector<128xf32> to vector<1x128xf32>
    %146 = arith.addf %111, %145 : vector<1x128xf32>
    %147 = arith.mulf %139, %139 : vector<16x128xf32>
    %cst_110 = arith.constant dense<0.000000e+00> : vector<128xf32>
    %148 = vector.multi_reduction <add>, %147, %cst_110 [0] : vector<16x128xf32> to vector<128xf32>
    %149 = vector.shape_cast %148 : vector<128xf32> to vector<1x128xf32>
    %150 = arith.addf %115, %149 : vector<1x128xf32>
    %c2_i32_111 = arith.constant 2 : i32
    %c0_112 = arith.constant 0 : index
    %c0_113 = arith.constant 0 : index
    %151 = vector.load %arg7[%c0_112, %c0_113] : memref<128x8xf32, #tpu.memory_space<vmem>>, vector<128x8xf32>
    %cst_114 = arith.constant dense<0.000000e+00> : vector<1x8xf32>
    %152 = tpu.matmul %146, %151, %cst_114 {dimension_numbers = #tpu.dot_dimension_numbers<[1], [0], [0], [1], [0, 0, 1, 1], [], []>} : vector<1x128xf32>, vector<128x8xf32>, vector<1x8xf32> -> vector<1x8xf32>
    %c0_115 = arith.constant 0 : index
    %c0_116 = arith.constant 0 : index
    %153 = vector.load %arg7[%c0_115, %c0_116] : memref<128x8xf32, #tpu.memory_space<vmem>>, vector<128x8xf32>
    %cst_117 = arith.constant dense<0.000000e+00> : vector<1x8xf32>
    %154 = tpu.matmul %150, %153, %cst_117 {dimension_numbers = #tpu.dot_dimension_numbers<[1], [0], [0], [1], [0, 0, 1, 1], [], []>} : vector<1x128xf32>, vector<128x8xf32>, vector<1x8xf32> -> vector<1x8xf32>
    %cst_118 = arith.constant 5.120000e+02 : f32
    %155 = vector.broadcast %cst_118 : f32 to vector<1x8xf32>
    %156 = arith.divf %152, %155 : vector<1x8xf32>
    %cst_119 = arith.constant 5.120000e+02 : f32
    %157 = vector.broadcast %cst_119 : f32 to vector<1x8xf32>
    %158 = arith.divf %154, %157 : vector<1x8xf32>
    %159 = arith.mulf %156, %156 : vector<1x8xf32>
    %160 = arith.subf %158, %159 : vector<1x8xf32>
    %c0_120 = arith.constant 0 : index
    %c0_121 = arith.constant 0 : index
    %161 = vector.load %arg5[%c0_120, %c0_121] : memref<1x8xf32, #tpu.memory_space<vmem>>, vector<1x8xf32>
    %cst_122 = arith.constant 9.99999974E-6 : f32
    %162 = vector.broadcast %cst_122 : f32 to vector<1x8xf32>
    %163 = arith.addf %160, %162 : vector<1x8xf32>
    %164 = math.rsqrt %163 : vector<1x8xf32>
    %165 = arith.mulf %161, %164 : vector<1x8xf32>
    %c0_123 = arith.constant 0 : index
    %c0_124 = arith.constant 0 : index
    %166 = vector.load %arg6[%c0_123, %c0_124] : memref<1x8xf32, #tpu.memory_space<vmem>>, vector<1x8xf32>
    %167 = arith.mulf %156, %165 : vector<1x8xf32>
    %168 = arith.subf %166, %167 : vector<1x8xf32>
    %c0_125 = arith.constant 0 : index
    %c0_126 = arith.constant 0 : index
    %169 = vector.load %arg8[%c0_125, %c0_126] : memref<8x128xf32, #tpu.memory_space<vmem>>, vector<8x128xf32>
    %cst_127 = arith.constant dense<0.000000e+00> : vector<1x128xf32>
    %170 = tpu.matmul %165, %169, %cst_127 {dimension_numbers = #tpu.dot_dimension_numbers<[1], [0], [0], [1], [0, 0, 1, 1], [], []>} : vector<1x8xf32>, vector<8x128xf32>, vector<1x128xf32> -> vector<1x128xf32>
    %c0_128 = arith.constant 0 : index
    %c0_129 = arith.constant 0 : index
    %171 = vector.load %arg8[%c0_128, %c0_129] : memref<8x128xf32, #tpu.memory_space<vmem>>, vector<8x128xf32>
    %cst_130 = arith.constant dense<0.000000e+00> : vector<1x128xf32>
    %172 = tpu.matmul %168, %171, %cst_130 {dimension_numbers = #tpu.dot_dimension_numbers<[1], [0], [0], [1], [0, 0, 1, 1], [], []>} : vector<1x8xf32>, vector<8x128xf32>, vector<1x128xf32> -> vector<1x128xf32>
    %c0_131 = arith.constant 0 : index
    %c0_132 = arith.constant 0 : index
    %c0_133 = arith.constant 0 : index
    %173 = vector.load %arg9[%c0_131, %c0_132, %c0_133] : memref<2x16x128xf32, #tpu.memory_space<vmem>>, vector<2x16x128xf32>
    %174 = vector.shape_cast %170 : vector<1x128xf32> to vector<1x1x128xf32>
    %175 = vector.broadcast %174 : vector<1x1x128xf32> to vector<2x16x128xf32>
    %176 = arith.mulf %173, %175 : vector<2x16x128xf32>
    %177 = vector.shape_cast %172 : vector<1x128xf32> to vector<1x1x128xf32>
    %178 = vector.broadcast %177 : vector<1x1x128xf32> to vector<2x16x128xf32>
    %179 = arith.addf %176, %178 : vector<2x16x128xf32>
    %cst_134 = arith.constant 0.000000e+00 : f32
    %180 = vector.broadcast %cst_134 : f32 to vector<2x16x128xf32>
    %181 = arith.maximumf %179, %180 : vector<2x16x128xf32>
    %c0_135 = arith.constant 0 : index
    %c0_136 = arith.constant 0 : index
    %c0_137 = arith.constant 0 : index
    %182 = vector.load %arg9[%c0_135, %c0_136, %c0_137] : memref<2x16x128xf32, #tpu.memory_space<vmem>>, vector<2x16x128xf32>
    tpu.vector_store %arg9[%c0_135, %c0_136, %c0_137], %181 {strides = array<i32>} : memref<2x16x128xf32, #tpu.memory_space<vmem>>, vector<2x16x128xf32>,
    return
  }
}

</mosaic_0001>

<bundles_post_ra>
// kernel: tpu_custom_call.1
= control target key start
LH: loop header
LB: loop body
LE: loop exit
PB: predicated region body
PF: predicated region fallthrough
CT: control target
= control target key end

     0   :  { %14 = vsyncpa [#allocation4], 0  ;;  %s3652_s0 = inlined_call_operand.vmem [shape: f32[2,18,64], index: 0, kind: input, shape index: {}]   ;;  %s3653_s1 = inlined_call_operand.vmem [shape: f32[3,64,128], index: 1, kind: input, shape index: {}]   ;;  %s3654_s2 = inlined_call_operand.hbm [shape: f32[3,128,128], index: 2, kind: input, shape index: {}]   ;;  %s3655_s3 = inlined_call_operand.vmem [shape: f32[1,8], index: 3, kind: input, shape index: {}]   ;;  %s3656_s4 = inlined_call_operand.vmem [shape: f32[1,8], index: 4, kind: input, shape index: {}]   ;;  %s3657_s5 = inlined_call_operand.vmem [shape: f32[1,8], index: 5, kind: input, shape index: {}]   ;;  %s3658_s6 = inlined_call_operand.vmem [shape: f32[1,8], index: 6, kind: input, shape index: {}]   ;;  %s3659_s7 = inlined_call_operand.vmem [shape: f32[128,8], index: 7, kind: input, shape index: {}]   ;;  %s3660_s8 = inlined_call_operand.vmem [shape: f32[8,128], index: 8, kind: input, shape index: {}]   ;;  %s3661_s9 = inlined_call_operand.hbm [shape: f32[2,16,128], index: 9, kind: output, shape index: {}]  }
   0x1   :  { %15 = vsyncpa [#allocation5], 0  ;;  %s3200_s30 = smov [#allocation3]   ;;  %s3152_s13 = scalar_lea.hbm %s3654_s2, 6144 }
   0x2   :  { %s25_s10 = sshll.u32 %s3200_s30, 4  ;;  %p3153_p0 = scmp.ne.s32.totalorder %s3654_s2, %s3152_s13  ;;  %s26_s10 = int_to_ptr.vmem [resolvable:$true] %s25_s10 }
   0x3   :  { %p3156_p1 = scmp.lt.u32.totalorder %s3152_s13, %s3654_s2 }
   0x5   :  { %p3158_p2 = pnand %p3156_p1, %p3153_p0 }
   0x7   :  { %3161 = shalt.err (!%p3158_p2)
}
   0x8   :  { %s3162_s18 = scalar_lea.vmem %s26_s10, 6144  ;;  %p3167_p4 = scmp.lt.s32.totalorder %s26_s10, %s26_s10 }
   0x9   :  { %p3163_p3 = scmp.ne.s32.totalorder %s26_s10, %s3162_s18  ;;  %p3168_p5 = scmp.lt.s32.totalorder %s3162_s18, %s3162_s18 }
   0xb   :  { %p3169_p6 = por %p3168_p5, %p3167_p4 }
   0xd   :  { %p3170_p7 = pnand %p3169_p6, %p3163_p3 }
   0xf   :  { %3173 = shalt.err (!%p3170_p7)
}
  0x10   :  { %s3201_s19 = smov 128   ;;  %s3202_s20 = smov 8  }
  0x11   :  { %31 = dma.hbm_to_vmem [thread:$0]  %s3654_s2, 6144, %s26_s10, [#allocation4], %s3201_s19, %s3201_s19, %s3202_s20  }
  0x12   :  { %3196 = dma.done.wait [#allocation4], 6144  }
  0x13   :  { %3197 = vsyncadd [#allocation4], 4294961152  ;;  %v1962_v0 = vld [vmem:[%s3653_s1 + $0x40] sm:$0xff]  ;;  %v1963_v1 = vld [vmem:[%s3653_s1 + $0x48] sm:$0xff]  ;;  %vm73_vm0 = vcmask 1046528   ;;  %vm79_vm1 = vcmask 523264  }
  0x14   :  { %v1964_v2 = vld [vmem:[%s3653_s1 + $0x50] sm:$0xff]  ;;  %v2741_v3 = vpack.c.bf16 %v1963_v1, %v1962_v0  ;;  %v1965_v4 = vld [vmem:[%s3653_s1 + $0x58] sm:$0xff]  ;;  %v1966_v6 = vld [vmem:[%s3653_s1 + $0x60] sm:$0xff]  ;;  %vm247_vm2 = vcmask 1045504   ;;  %v3203_v1 = vmov 0.0|0.0   ;;  %vm3204_vm3 = vmmov 0  }
  0x15   :  { %v2745_v5 = vpack.c.bf16 %v1965_v4, %v1964_v2  ;;  %v1967_v7 = vld [vmem:[%s3653_s1 + $0x68] sm:$0xff]  ;;  %v3293_v8 = vld [vmem:[%s3652_s0] sm:$0xff]  ;;  %v3305_v12 = vld [vmem:[%s3652_s0 + $0x18] sm:$0xff]  ;;  %vm824_vm4 = vcmask 64512  }
  0x16   :  { %2742 = vmatprep.subr.bf16.mxu0 %v2741_v3  ;;  %2790 = vmatprep.subr.bf16.mxu1 %v2741_v3  ;;  %v3298_v9 = vld [vmem:[%s3652_s0 + $0x8] sm:$0xff]  ;;  %v74_v10 = vrot.slane %v3293_v8, 1  ;;  %v3310_v13 = vld [vmem:[%s3652_s0 + $0x20] sm:$0xff]  ;;  %v2749_v14 = vpack.c.bf16 %v1967_v7, %v1966_v6  ;;  %v377_v15 = vrot.slane %v3305_v12, 1  ;;  %v1968_v17 = vld [vmem:[%s3653_s1 + $0x70] sm:$0xff]  ;;  %v248_v45 = vrot.slane %v3293_v8, 2 }
  0x17   :  { %2744 = vmatpush3.bf16.msra.mxu0 %v2741_v3  ;;  %2792 = vmatpush3.bf16.msra.mxu1 %v2741_v3  ;;  %v75_v11 = vrot.slane %v3298_v9, 1  ;;  %v378_v16 = vrot.slane %v3310_v13, 1  ;;  %v1969_v18 = vld [vmem:[%s3653_s1 + $0x78] sm:$0xff]  ;;  %v3326_v22 = vld [vmem:[%s3652_s0 + $0x10] sm:$0x3]  ;;  %v53_v24 = vld [vmem:[%s3653_s1] sm:$0xff] }
  0x18   :  { %2746 = vmatprep.subr.bf16.mxu0 %v2745_v5  ;;  %2794 = vmatprep.subr.bf16.mxu1 %v2745_v5  ;;  %v2753_v21 = vpack.c.bf16 %v1969_v18, %v1968_v17  ;;  %v3331_v23 = vld [vmem:[%s3652_s0 + $0x28] sm:$0x3]  ;;  %v77_v26 = vrot.slane %v3326_v22, 1  ;;  %v55_v29 = vld [vmem:[%s3653_s1 + $0x10] sm:$0xff]  ;;  %v56_v30 = vld [vmem:[%s3653_s1 + $0x18] sm:$0xff]  ;;  %v249_v46 = vrot.slane %v3298_v9, 2 }
  0x19   :  { %v76_v19 = vsel %vm73_vm0, %v74_v10, %v75_v11  ;;  %v379_v20 = vsel %vm73_vm0, %v377_v15, %v378_v16  ;;  %v54_v25 = vld [vmem:[%s3653_s1 + $0x8] sm:$0xff]  ;;  %v380_v27 = vrot.slane %v3331_v23, 1  ;;  %v2761_v33 = vpack.c.bf16 %v56_v30, %v55_v29  ;;  %v57_v34 = vld [vmem:[%s3653_s1 + $0x20] sm:$0xff]  ;;  %v59_v37 = vld [vmem:[%s3653_s1 + $0x30] sm:$0xff] }
  0x1a   :  { %2273 = vmatprep.mubr.msk.f32.mxu0 %vm79_vm1, %v76_v19  ;;  %2330 = vmatprep.mubr.msk.f32.mxu1 %vm79_vm1, %v379_v20  ;;  %v2757_v28 = vpack.c.bf16 %v54_v25, %v53_v24  ;;  %v78_v31 = vsel %vm73_vm0, %v75_v11, %v77_v26  ;;  %v58_v35 = vld [vmem:[%s3653_s1 + $0x28] sm:$0xff]  ;;  %v60_v38 = vld [vmem:[%s3653_s1 + $0x38] sm:$0xff]  ;;  %v1974_v40 = vld [vmem:[%s3653_s1 + $0x80] sm:$0xff]  ;;  %v548_v47 = vrot.slane %v3305_v12, 2  ;;  %v549_v48 = vrot.slane %v3310_v13, 2 }
  0x1b   :  { %2748 = vmatpush3.bf16.msra.mxu0 %v2745_v5  ;;  %2796 = vmatpush3.bf16.msra.mxu1 %v2745_v5  ;;  %v381_v32 = vsel %vm73_vm0, %v378_v16, %v380_v27  ;;  %v2765_v36 = vpack.c.bf16 %v58_v35, %v57_v34  ;;  %v2769_v39 = vpack.c.bf16 %v60_v38, %v59_v37  ;;  %v1975_v41 = vld [vmem:[%s3653_s1 + $0x88] sm:$0xff]  ;;  %v1976_v43 = vld [vmem:[%s3653_s1 + $0x90] sm:$0xff]  ;;  %v1977_v44 = vld [vmem:[%s3653_s1 + $0x98] sm:$0xff]  ;;  %v251_v58 = vrot.slane %v3326_v22, 2 }
  0x1c   :  { %2750 = vmatprep.subr.bf16.mxu0 %v2749_v14  ;;  %2798 = vmatprep.subr.bf16.mxu1 %v2749_v14  ;;  %v2773_v42 = vpack.c.bf16 %v1975_v41, %v1974_v40  ;;  %v2777_v49 = vpack.c.bf16 %v1977_v44, %v1976_v43  ;;  %v1978_v50 = vld [vmem:[%s3653_s1 + $0xa0] sm:$0xff]  ;;  %v1979_v51 = vld [vmem:[%s3653_s1 + $0xa8] sm:$0xff]  ;;  %v250_v52 = vsel %vm247_vm2, %v248_v45, %v249_v46  ;;  %v1980_v55 = vld [vmem:[%s3653_s1 + $0xb0] sm:$0xff]  ;;  %v551_v59 = vrot.slane %v3331_v23, 2 }
  0x1d   :  { %v550_v53 = vsel %vm247_vm2, %v548_v47, %v549_v48  ;;  %v2781_v54 = vpack.c.bf16 %v1979_v51, %v1978_v50  ;;  %v1981_v56 = vld [vmem:[%s3653_s1 + $0xb8] sm:$0xff]  ;;  %v655_v60 = vld [vmem:[%s3659_s7] sm:$0xff]  ;;  %v656_v61 = vld [vmem:[%s3659_s7 + $0x8] sm:$0xff]  ;;  %v252_v62 = vsel %vm247_vm2, %v249_v46, %v251_v58  ;;  %v3205_v23 = vmov 0.0  }
  0x1e   :  { %v2785_v57 = vpack.c.bf16 %v1981_v56, %v1980_v55  ;;  %v552_v63 = vsel %vm247_vm2, %v549_v48, %v551_v59  ;;  %v3414_v0 = vpack.c.bf16 %v656_v61, %v655_v60  ;;  %v657_v2 = vld [vmem:[%s3659_s7 + $0x10] sm:$0xff]  ;;  %v658_v3 = vld [vmem:[%s3659_s7 + $0x18] sm:$0xff]  ;;  %v659_v5 = vld [vmem:[%s3659_s7 + $0x20] sm:$0xff]  ;;  %47 = vst [vmem:[#allocation2] sm:$0xff] %v3205_v23 }
  0x1f   :  { %2752 = vmatpush3.bf16.msra.mxu0 %v2749_v14  ;;  %2800 = vmatpush3.bf16.msra.mxu1 %v2749_v14  ;;  %v3428_v4 = vpack.c.bf16 %v658_v3, %v657_v2  ;;  %v660_v6 = vld [vmem:[%s3659_s7 + $0x28] sm:$0xff]  ;;  %v663_v11 = vld [vmem:[%s3659_s7 + $0x40] sm:$0xff]  ;;  %v665_v14 = vld [vmem:[%s3659_s7 + $0x50] sm:$0xff]  ;;  %48 = vst [vmem:[#allocation2 + $0x8] sm:$0xff] %v3205_v23 }
  0x20   :  { %2754 = vmatprep.subr.bf16.mxu0 %v2753_v21  ;;  %2802 = vmatprep.subr.bf16.mxu1 %v2753_v21  ;;  %v3440_v7 = vpack.c.bf16 %v660_v6, %v659_v5  ;;  %v666_v15 = vld [vmem:[%s3659_s7 + $0x58] sm:$0xff]  ;;  %v667_v17 = vld [vmem:[%s3659_s7 + $0x60] sm:$0xff]  ;;  %v668_v18 = vld [vmem:[%s3659_s7 + $0x68] sm:$0xff]  ;;  %49 = vst [vmem:[#allocation2 + $0x10] sm:$0x3] %v3205_v23 }
  0x21   :  { %v3478_v16 = vpack.c.bf16 %v666_v15, %v665_v14  ;;  %v3490_v19 = vpack.c.bf16 %v668_v18, %v667_v17  ;;  %v669_v20 = vld [vmem:[%s3659_s7 + $0x70] sm:$0xff]  ;;  %v1011_v2 = vld [vmem:[#allocation3 + $0x88] sm:$0xff] }
  0x22   :  { %v816_v18 = vld [vmem:[%s3655_s3] sm:$0x1] }
  0x23   :  { %2756 = vmatpush3.bf16.msra.mxu0 %v2753_v21  ;;  %2804 = vmatpush3.bf16.msra.mxu1 %v2753_v21  ;;  %v670_v21 = vld [vmem:[%s3659_s7 + $0x78] sm:$0xff] }
  0x24   :  { %2758 = vmatprep.subr.bf16.mxu0 %v2757_v28  ;;  %2806 = vmatprep.subr.bf16.mxu1 %v2757_v28  ;;  %v3502_v22 = vpack.c.bf16 %v670_v21, %v669_v20  ;;  %v1012_v20 = vld [vmem:[#allocation3 + $0x90] sm:$0xff]  ;;  %v1013_v21 = vld [vmem:[#allocation3 + $0x98] sm:$0xff] }
  0x26   :  { %2274 = vmatmul.mubr.msk.f32.vlgmr.msra.gmra.mrb[0].mxu0 %vm79_vm1, %v78_v31  ;;  %2331 = vmatmul.mubr.msk.f32.vlgmr.msra.gmra.mrb[0].mxu1 %vm79_vm1, %v381_v32 }
  0x27   :  { %2760 = vmatpush3.bf16.msra.mxu0 %v2757_v28  ;;  %2808 = vmatpush3.bf16.msra.mxu1 %v2757_v28 }
  0x28   :  { %2762 = vmatprep.subr.bf16.mxu0 %v2761_v33  ;;  %2810 = vmatprep.subr.bf16.mxu1 %v2761_v33 }
  0x29   :  { %2292 = vmatprep.mubr.msk.f32.mxu0 %vm79_vm1, %v3293_v8  ;;  %2349 = vmatprep.mubr.msk.f32.mxu1 %vm79_vm1, %v3305_v12  ;;  %v661_v8 = vld [vmem:[%s3659_s7 + $0x30] sm:$0xff]  ;;  %v664_v12 = vld [vmem:[%s3659_s7 + $0x48] sm:$0xff] }
  0x2b   :  { %2764 = vmatpush3.bf16.msra.mxu0 %v2761_v33  ;;  %2812 = vmatpush3.bf16.msra.mxu1 %v2761_v33 }
  0x2c   :  { %2766 = vmatprep.subr.bf16.mxu0 %v2765_v36  ;;  %2814 = vmatprep.subr.bf16.mxu1 %v2765_v36 }
  0x2f   :  { %2768 = vmatpush3.bf16.msra.mxu0 %v2765_v36  ;;  %2816 = vmatpush3.bf16.msra.mxu1 %v2765_v36 }
  0x30   :  { %2770 = vmatprep.subr.bf16.mxu0 %v2769_v39  ;;  %2818 = vmatprep.subr.bf16.mxu1 %v2769_v39 }
  0x33   :  { %2772 = vmatpush3.bf16.msra.mxu0 %v2769_v39  ;;  %2820 = vmatpush3.bf16.msra.mxu1 %v2769_v39 }
  0x34   :  { %2774 = vmatprep.subr.bf16.mxu0 %v2773_v42  ;;  %2822 = vmatprep.subr.bf16.mxu1 %v2773_v42 }
  0x36   :  { %2293 = vmatmul.mubr.msk.f32.vlgmr.msra.gmra.mrb[0].mxu0 %vm79_vm1, %v3298_v9  ;;  %2350 = vmatmul.mubr.msk.f32.vlgmr.msra.gmra.mrb[0].mxu1 %vm79_vm1, %v3310_v13  ;;  %v662_v9 = vld [vmem:[%s3659_s7 + $0x38] sm:$0xff]  ;;  %v3466_v13 = vpack.c.bf16 %v664_v12, %v663_v11 }
  0x37   :  { %2776 = vmatpush3.bf16.msra.mxu0 %v2773_v42  ;;  %2824 = vmatpush3.bf16.msra.mxu1 %v2773_v42  ;;  %v3452_v10 = vpack.c.bf16 %v662_v9, %v661_v8 }
  0x38   :  { %2778 = vmatprep.subr.bf16.mxu0 %v2777_v49  ;;  %2826 = vmatprep.subr.bf16.mxu1 %v2777_v49 }
  0x39   :  { %2311 = vmatprep.mubr.msk.f32.mxu0 %vm79_vm1, %v250_v52  ;;  %2368 = vmatprep.mubr.msk.f32.mxu1 %vm79_vm1, %v550_v53 }
  0x3b   :  { %2780 = vmatpush3.bf16.msra.mxu0 %v2777_v49  ;;  %2828 = vmatpush3.bf16.msra.mxu1 %v2777_v49 }
  0x3c   :  { %2782 = vmatprep.subr.bf16.mxu0 %v2781_v54  ;;  %2830 = vmatprep.subr.bf16.mxu1 %v2781_v54 }
  0x3f   :  { %2784 = vmatpush3.bf16.msra.mxu0 %v2781_v54  ;;  %2832 = vmatpush3.bf16.msra.mxu1 %v2781_v54 }
  0x40   :  { %2786 = vmatprep.subr.bf16.mxu0 %v2785_v57  ;;  %2834 = vmatprep.subr.bf16.mxu1 %v2785_v57 }
  0x43   :  { %2788 = vmatpush3.bf16.msra.mxu0 %v2785_v57  ;;  %2836 = vmatpush3.bf16.msra.mxu1 %v2785_v57 }
  0x44   :  { %2837 = vmatprep.subr.bf16.mxu0 %v3203_v1  ;;  %2861 = vmatprep.subr.bf16.mxu1 %v3203_v1 }
  0x46   :  { %2312 = vmatmul.mubr.msk.f32.vlgmr.msra.gmra.mrb[0].mxu0 %vm79_vm1, %v252_v62  ;;  %2369 = vmatmul.mubr.msk.f32.vlgmr.msra.gmra.mrb[0].mxu1 %vm79_vm1, %v552_v63  ;;  %v3542_v62 = vld [vmem:[%s3660_s8] sm:$0xff]  ;;  %v1010_v63 = vld [vmem:[#allocation3 + $0x80] sm:$0xff] }
  0x47   :  { %2839 = vmatpush3.bf16.msra.mxu0 %v3414_v0  ;;  %2863 = vmatpush3.bf16.msra.mxu1 %v3414_v0  ;;  %v2885_v3 = vpack.c.bf16 %v1011_v2, %v1010_v63 }
  0x48   :  { %2840 = vmatprep.subr.bf16.mxu0 %v3203_v1  ;;  %2864 = vmatprep.subr.bf16.mxu1 %v3203_v1 }
  0x49   :  { %2403 = vmatprep.mubr.msk.f32.mxu0 %vm3204_vm3, %v3205_v23  ;;  %2438 = vmatprep.mubr.msk.f32.mxu1 %vm3204_vm3, %v3205_v23 }
  0x4b   :  { %2842 = vmatpush3.bf16.msra.mxu0 %v3428_v4  ;;  %2866 = vmatpush3.bf16.msra.mxu1 %v3428_v4 }
  0x4c   :  { %2843 = vmatprep.subr.bf16.mxu0 %v3203_v1  ;;  %2867 = vmatprep.subr.bf16.mxu1 %v3203_v1 }
  0x4f   :  { %2845 = vmatpush3.bf16.msra.mxu0 %v3440_v7  ;;  %2869 = vmatpush3.bf16.msra.mxu1 %v3440_v7 }
  0x50   :  { %2846 = vmatprep.subr.bf16.mxu0 %v3203_v1  ;;  %2870 = vmatprep.subr.bf16.mxu1 %v3203_v1 }
  0x53   :  { %2848 = vmatpush3.bf16.msra.mxu0 %v3452_v10  ;;  %2872 = vmatpush3.bf16.msra.mxu1 %v3452_v10 }
  0x54   :  { %2849 = vmatprep.subr.bf16.mxu0 %v3203_v1  ;;  %2873 = vmatprep.subr.bf16.mxu1 %v3203_v1 }
  0x57   :  { %2851 = vmatpush3.bf16.msra.mxu0 %v3466_v13  ;;  %2875 = vmatpush3.bf16.msra.mxu1 %v3466_v13 }
  0x58   :  { %2852 = vmatprep.subr.bf16.mxu0 %v3203_v1  ;;  %2876 = vmatprep.subr.bf16.mxu1 %v3203_v1 }
  0x5b   :  { %2854 = vmatpush3.bf16.msra.mxu0 %v3478_v16  ;;  %2878 = vmatpush3.bf16.msra.mxu1 %v3478_v16 }
  0x5c   :  { %2855 = vmatprep.subr.bf16.mxu0 %v3203_v1  ;;  %2879 = vmatprep.subr.bf16.mxu1 %v3203_v1 }
  0x5f   :  { %2857 = vmatpush3.bf16.msra.mxu0 %v3490_v19  ;;  %2881 = vmatpush3.bf16.msra.mxu1 %v3490_v19 }
  0x60   :  { %2858 = vmatprep.subr.bf16.mxu0 %v3203_v1  ;;  %2882 = vmatprep.subr.bf16.mxu1 %v3203_v1 }
  0x63   :  { %2860 = vmatpush3.bf16.msra.mxu0 %v3502_v22  ;;  %2884 = vmatpush3.bf16.msra.mxu1 %v3502_v22 }
  0x64   :  { %2441 = vmatprep.subr.mxu0 %v3205_v23  ;;  %2446 = vmatprep.subr.mxu1 %v3205_v23 }
 0x119   :  { %v3515_v24 = vpop.f32.mrb[0].mxu0  ;;  %v3517_v25 = vpop.f32.mrb[0].mxu1 }
 0x11a   :  { %v345_v26 = vmul.f32 %v3515_v24, %v3515_v24  ;;  %v646_v27 = vmul.f32 %v3517_v25, %v3517_v25  ;;  %v3523_v28 = vpop.f32.mrb[1].mxu0  ;;  %v3525_v29 = vpop.f32.mrb[1].mxu1 }
 0x11b   :  { %v336_v30 = vadd.f32 %v3515_v24, %v3523_v28  ;;  %v344_v31 = vmul.f32 %v3523_v28, %v3523_v28  ;;  %v637_v32 = vadd.f32 %v3517_v25, %v3525_v29  ;;  %v645_v33 = vmul.f32 %v3525_v29, %v3525_v29 }
 0x11d   :  { %v337_v34 = vrot.slane %v336_v30, 4  ;;  %v346_v35 = vadd.f32 %v345_v26, %v344_v31  ;;  %v638_v36 = vrot.slane %v637_v32, 4  ;;  %v647_v37 = vadd.f32 %v646_v27, %v645_v33  ;;  %v820_v31 = vld [vmem:[%s3656_s4] sm:$0x1] }
 0x11e   :  { %v1015_v33 = vld [vmem:[#allocation3 + $0xa8] sm:$0xff] }
 0x11f   :  { %v338_v38 = vadd.f32 %v337_v34, %v336_v30  ;;  %v347_v39 = vrot.slane %v346_v35, 4  ;;  %v639_v40 = vadd.f32 %v638_v36, %v637_v32  ;;  %v648_v41 = vrot.slane %v647_v37, 4  ;;  %v1014_v32 = vld [vmem:[#allocation3 + $0xa0] sm:$0xff] }
 0x120   :  { %v2889_v30 = vpack.c.bf16 %v1013_v21, %v1012_v20  ;;  %v2893_v36 = vpack.c.bf16 %v1015_v33, %v1014_v32 }
 0x121   :  { %v339_v42 = vrot.slane %v338_v38, 2  ;;  %v348_v43 = vadd.f32 %v347_v39, %v346_v35  ;;  %v640_v44 = vrot.slane %v639_v40, 2  ;;  %v649_v45 = vadd.f32 %v648_v41, %v647_v37  ;;  %v1016_v37 = vld [vmem:[#allocation3 + $0xb0] sm:$0xff]  ;;  %v1019_v41 = vld [vmem:[#allocation3 + $0xc8] sm:$0xff] }
 0x123   :  { %v340_v46 = vadd.f32 %v339_v42, %v338_v38  ;;  %v349_v47 = vrot.slane %v348_v43, 2  ;;  %v641_v48 = vadd.f32 %v640_v44, %v639_v40  ;;  %v650_v49 = vrot.slane %v649_v45, 2  ;;  %v1017_v38 = vld [vmem:[#allocation3 + $0xb8] sm:$0xff]  ;;  %v1018_v40 = vld [vmem:[#allocation3 + $0xc0] sm:$0xff] }
 0x124   :  { %v2897_v39 = vpack.c.bf16 %v1017_v38, %v1016_v37  ;;  %v2901_v42 = vpack.c.bf16 %v1019_v41, %v1018_v40  ;;  %v1021_v44 = vld [vmem:[#allocation3 + $0xd8] sm:$0xff]  ;;  %v1000_v37 = vld [vmem:[#allocation3 + $0x48] sm:$0xff] }
 0x125   :  { %v341_v50 = vrot.slane %v340_v46, 1  ;;  %v350_v51 = vadd.f32 %v349_v47, %v348_v43  ;;  %v642_v52 = vrot.slane %v641_v48, 1  ;;  %v651_v53 = vadd.f32 %v650_v49, %v649_v45  ;;  %v1020_v43 = vld [vmem:[#allocation3 + $0xd0] sm:$0xff]  ;;  %v1023_v47 = vld [vmem:[#allocation3 + $0xe8] sm:$0xff]  ;;  %v1002_v40 = vld [vmem:[#allocation3 + $0x58] sm:$0xff] }
 0x126   :  { %v2905_v45 = vpack.c.bf16 %v1021_v44, %v1020_v43  ;;  %v1024_v49 = vld [vmem:[#allocation3 + $0xf0] sm:$0xff]  ;;  %v1003_v43 = vld [vmem:[#allocation3 + $0x60] sm:$0xff]  ;;  %v1004_v44 = vld [vmem:[#allocation3 + $0x68] sm:$0xff] }
 0x127   :  { %v342_v54 = vadd.f32 %v341_v50, %v340_v46  ;;  %v643_v55 = vadd.f32 %v642_v52, %v641_v48  ;;  %v351_v56 = vrot.slane %v350_v51, 1  ;;  %v652_v57 = vrot.slane %v651_v53, 1  ;;  %v1022_v46 = vld [vmem:[#allocation3 + $0xe0] sm:$0xff]  ;;  %v1025_v50 = vld [vmem:[#allocation3 + $0xf8] sm:$0xff] }
 0x128   :  { %v2909_v48 = vpack.c.bf16 %v1023_v47, %v1022_v46  ;;  %v991_v52 = vld [vmem:[#allocation3] sm:$0xff]  ;;  %v1005_v46 = vld [vmem:[#allocation3 + $0x70] sm:$0xff]  ;;  %v1006_v47 = vld [vmem:[#allocation3 + $0x78] sm:$0xff] }
 0x129   :  { %v644_v58 = vadd.f32 %v643_v55, %v342_v54  ;;  %v352_v59 = vadd.f32 %v351_v56, %v350_v51  ;;  %v653_v60 = vadd.f32 %v652_v57, %v651_v53  ;;  %v2913_v51 = vpack.c.bf16 %v1025_v50, %v1024_v49  ;;  %v992_v53 = vld [vmem:[#allocation3 + $0x8] sm:$0xff]  ;;  %v1179_v49 = vld [vmem:[#allocation3 + $0x100] sm:$0xff] }
 0x12a   :  { %v2917_v54 = vpack.c.bf16 %v992_v53, %v991_v52  ;;  %v973_v55 = vlaneseq  ;;  %v1180_v50 = vld [vmem:[#allocation3 + $0x108] sm:$0xff]  ;;  %v1181_v52 = vld [vmem:[#allocation3 + $0x110] sm:$0xff]  ;;  %v1182_v53 = vld [vmem:[#allocation3 + $0x118] sm:$0xff] }
 0x12b   :  { %2404 = vmatmul.mubr.f32.vlgmr.msra.gmra.mrb[2].mxu0 %v644_v58  ;;  %v654_v61 = vadd.f32 %v653_v60, %v352_v59 }
 0x12c   :  { %2443 = vmatprep.mubr.msk.f32.mxu0 %vm3204_vm3, %v3205_v23  ;;  %2442 = vmatpush3.msra.mxu0 %v3542_v62  ;;  %v974_v56 = vshrl.u32 %v973_v55, 7  ;;  %v1183_v55 = vld [vmem:[#allocation3 + $0x120] sm:$0xff] }
 0x12d   :  { %2439 = vmatmul.mubr.f32.vlgmr.msra.gmra.mrb[2].mxu1 %v654_v61  ;;  %2886 = vmatprep.subr.bf16.mxu0 %v2885_v3 }
 0x12e   :  { %2448 = vmatprep.mubr.msk.f32.mxu1 %vm3204_vm3, %v3205_v23  ;;  %2447 = vmatpush3.msra.mxu1 %v3542_v62  ;;  %v3554_v57 = vsub.s32 0, %v974_v56  ;;  %v1184_v56 = vld [vmem:[#allocation3 + $0x128] sm:$0xff] }
 0x12f   :  { %2982 = vmatprep.subr.bf16.mxu1 %v2885_v3 }
 0x1fe   :  { %v737_v5 = vpop.f32.mrb[2].mxu0 }
 0x1ff   :  { %v812_v6 = vmul.f32 0.001953125, %v737_v5  ;;  %v2405_v8 = vpop.f32.mrb[3].mxu0 }
 0x200   :  { %v807_v9 = vpop.f32.mrb[2].mxu1 }
 0x201   :  { %v814_v11 = vmul.f32 %v812_v6, %v812_v6  ;;  %v813_v12 = vmul.f32 0.001953125, %v807_v9  ;;  %v2440_v14 = vpop.f32.mrb[3].mxu1 }
 0x203   :  { %v815_v15 = vsub.f32 %v813_v12, %v814_v11 }
 0x205   :  { %v817_v17 = vadd.f32 1e-05, %v815_v15  ;;  %v993_v15 = vld [vmem:[#allocation3 + $0x10] sm:$0xff] }
 0x207   :  { %3148 = vrsqrt.f32 %v817_v17  ;;  %v994_v17 = vld [vmem:[#allocation3 + $0x18] sm:$0xff] }
 0x211   :  { %v3149_v26 = vpop.eup %3148 }
 0x212   :  { %v819_v27 = vmul.f32 %v3149_v26, %v816_v18  ;;  %v2921_v26 = vpack.c.bf16 %v994_v17, %v993_v15  ;;  %v1193_v17 = vld [vmem:[#allocation3 + $0x170] sm:$0xff] }
 0x214   :  { %2444 = vmatmul.mubr.msk.f32.vlgmr.msra.gmra.mrb[4].mxu0 %vm824_vm4, %v819_v27  ;;  %v821_v34 = vmul.f32 %v819_v27, %v812_v6  ;;  %v997_v27 = vld [vmem:[#allocation3 + $0x30] sm:$0xff] }
 0x215   :  { %2888 = vmatpush3.bf16.msra.mxu0 %v2885_v3 }
 0x216   :  { %v822_v35 = vsub.f32 %v820_v31, %v821_v34  ;;  %2890 = vmatprep.subr.bf16.mxu0 %v2889_v30 }
 0x218   :  { %2449 = vmatmul.mubr.msk.f32.vlgmr.msra.gmra.mrb[4].mxu1 %vm824_vm4, %v822_v35 }
 0x219   :  { %2892 = vmatpush3.bf16.msra.mxu0 %v2889_v30  ;;  %2984 = vmatpush3.bf16.msra.mxu1 %v2885_v3 }
 0x21a   :  { %2894 = vmatprep.subr.bf16.mxu0 %v2893_v36  ;;  %2986 = vmatprep.subr.bf16.mxu1 %v2889_v30 }
 0x21d   :  { %2896 = vmatpush3.bf16.msra.mxu0 %v2893_v36  ;;  %2988 = vmatpush3.bf16.msra.mxu1 %v2889_v30  ;;  %v998_v30 = vld [vmem:[#allocation3 + $0x38] sm:$0xff] }
 0x21e   :  { %2898 = vmatprep.subr.bf16.mxu0 %v2897_v39  ;;  %2990 = vmatprep.subr.bf16.mxu1 %v2893_v36  ;;  %v2929_v34 = vpack.c.bf16 %v998_v30, %v997_v27 }
 0x221   :  { %2900 = vmatpush3.bf16.msra.mxu0 %v2897_v39  ;;  %2992 = vmatpush3.bf16.msra.mxu1 %v2893_v36  ;;  %v999_v36 = vld [vmem:[#allocation3 + $0x40] sm:$0xff] }
 0x222   :  { %2994 = vmatprep.subr.bf16.mxu1 %v2897_v39  ;;  %2902 = vmatprep.subr.bf16.mxu0 %v2901_v42  ;;  %v2933_v38 = vpack.c.bf16 %v1000_v37, %v999_v36 }
 0x225   :  { %2996 = vmatpush3.bf16.msra.mxu1 %v2897_v39  ;;  %2904 = vmatpush3.bf16.msra.mxu0 %v2901_v42  ;;  %v1001_v39 = vld [vmem:[#allocation3 + $0x50] sm:$0xff] }
 0x226   :  { %2998 = vmatprep.subr.bf16.mxu1 %v2901_v42  ;;  %2906 = vmatprep.subr.bf16.mxu0 %v2905_v45  ;;  %v2937_v41 = vpack.c.bf16 %v1002_v40, %v1001_v39 }
 0x229   :  { %3000 = vmatpush3.bf16.msra.mxu1 %v2901_v42  ;;  %2908 = vmatpush3.bf16.msra.mxu0 %v2905_v45 }
 0x22a   :  { %3002 = vmatprep.subr.bf16.mxu1 %v2905_v45  ;;  %2910 = vmatprep.subr.bf16.mxu0 %v2909_v48 }
 0x22d   :  { %3004 = vmatpush3.bf16.msra.mxu1 %v2905_v45  ;;  %2912 = vmatpush3.bf16.msra.mxu0 %v2909_v48  ;;  %v2941_v45 = vpack.c.bf16 %v1004_v44, %v1003_v43 }
 0x22e   :  { %3006 = vmatprep.subr.bf16.mxu1 %v2909_v48  ;;  %2914 = vmatprep.subr.bf16.mxu0 %v2913_v51 }
 0x231   :  { %3008 = vmatpush3.bf16.msra.mxu1 %v2909_v48  ;;  %2916 = vmatpush3.bf16.msra.mxu0 %v2913_v51  ;;  %v2945_v48 = vpack.c.bf16 %v1006_v47, %v1005_v46 }
 0x232   :  { %3010 = vmatprep.subr.bf16.mxu1 %v2913_v51  ;;  %2918 = vmatprep.subr.bf16.mxu0 %v2917_v54 }
 0x235   :  { %3012 = vmatpush3.bf16.msra.mxu1 %v2913_v51  ;;  %v2949_v51 = vpack.c.bf16 %v1180_v50, %v1179_v49 }
 0x236   :  { %3014 = vmatprep.subr.bf16.mxu1 %v2917_v54 }
 0x2e7   :  { %v894_v58 = vpop.f32.mrb[4].mxu0 }
 0x2e8   :  { %v976_v59 = vrot.slane %v894_v58, %v3554_v57  ;;  %v2445_v60 = vpop.f32.mrb[5].mxu0 }
 0x2ea   :  { %v977_v61 = vmul.f32 %v976_v59, %v3523_v28  ;;  %v978_v63 = vmul.f32 %v3515_v24, %v976_v59  ;;  %v1294_v2 = vmul.f32 %v976_v59, %v3525_v29  ;;  %v1295_v3 = vmul.f32 %v3517_v25, %v976_v59  ;;  %v995_v24 = vld [vmem:[#allocation3 + $0x20] sm:$0xff]  ;;  %v996_v25 = vld [vmem:[#allocation3 + $0x28] sm:$0xff] }
 0x2eb   :  { %v967_v5 = vpop.f32.mrb[4].mxu1  ;;  %v2925_v29 = vpack.c.bf16 %v996_v25, %v995_v24  ;;  %v2957_v59 = vpack.c.bf16 %v1184_v56, %v1183_v55 }
 0x2ec   :  { %v982_v6 = vrot.slane %v967_v5, %v3554_v57  ;;  %v2450_v8 = vpop.f32.mrb[5].mxu1  ;;  %v1188_v5 = vld [vmem:[#allocation3 + $0x148] sm:$0xff] }
 0x2ed   :  { %v1189_v8 = vld [vmem:[#allocation3 + $0x150] sm:$0xff] }
 0x2ee   :  { %v983_v9 = vadd.f32 %v982_v6, %v977_v61  ;;  %v984_v11 = vadd.f32 %v982_v6, %v978_v63  ;;  %v1296_v12 = vadd.f32 %v1294_v2, %v982_v6  ;;  %v1297_v14 = vadd.f32 %v1295_v3, %v982_v6  ;;  %v1185_v61 = vld [vmem:[#allocation3 + $0x130] sm:$0xff]  ;;  %v1186_v63 = vld [vmem:[#allocation3 + $0x138] sm:$0xff]  ;;  %v1187_v3 = vld [vmem:[#allocation3 + $0x140] sm:$0xff] }
 0x2ef   :  { %v2961_v2 = vpack.c.bf16 %v1186_v63, %v1185_v61  ;;  %v2965_v6 = vpack.c.bf16 %v1188_v5, %v1187_v3 }
 0x2f0   :  { %v985_v18 = vmax.f32 %v983_v9, 0.0  ;;  %v986_v20 = vmax.f32 %v984_v11, 0.0  ;;  %v1298_v21 = vmax.f32 %v1296_v12, 0.0  ;;  %v1299_v28 = vmax.f32 %v1297_v14, 0.0  ;;  %v1190_v9 = vld [vmem:[#allocation3 + $0x158] sm:$0xff]  ;;  %v1191_v12 = vld [vmem:[#allocation3 + $0x160] sm:$0xff] }
 0x2f1   :  { %v2969_v11 = vpack.c.bf16 %v1190_v9, %v1189_v8  ;;  %v1192_v14 = vld [vmem:[#allocation3 + $0x168] sm:$0xff] }
 0x2f2   :  { %987 = vst [vmem:[#allocation2 + $0x1] sm:$0xff] %v985_v18  ;;  %988 = vst [vmem:[#allocation2 + $0x9] sm:$0xff] %v986_v20  ;;  %2483 = vmatprep.mubr.f32.mxu0 %v985_v18  ;;  %2588 = vmatprep.mubr.f32.mxu1 %v1298_v21  ;;  %v2973_v15 = vpack.c.bf16 %v1192_v14, %v1191_v12  ;;  %v1194_v18 = vld [vmem:[#allocation3 + $0x178] sm:$0xff] }
 0x2f3   :  { %2484 = vmatmul.mubr.f32.vlgmr.msra.gmra.mrb[6].mxu0 %v986_v20  ;;  %2589 = vmatmul.mubr.f32.vlgmr.msra.gmra.mrb[6].mxu1 %v1299_v28  ;;  %v2977_v20 = vpack.c.bf16 %v1194_v18, %v1193_v17 }
 0x2f4   :  { %2920 = vmatpush3.bf16.msra.mxu0 %v2917_v54  ;;  %3016 = vmatpush3.bf16.msra.mxu1 %v2917_v54  ;;  %v2953_v54 = vpack.c.bf16 %v1182_v53, %v1181_v52 }
 0x2f5   :  { %2922 = vmatprep.subr.bf16.mxu0 %v2921_v26  ;;  %3018 = vmatprep.subr.bf16.mxu1 %v2921_v26 }
 0x2f8   :  { %2924 = vmatpush3.bf16.msra.mxu0 %v2921_v26  ;;  %3020 = vmatpush3.bf16.msra.mxu1 %v2921_v26 }
 0x2f9   :  { %v990_v31 = vld [vmem:[#allocation2 + $0x8] sm:$0xff]  ;;  %2926 = vmatprep.subr.bf16.mxu0 %v2925_v29  ;;  %3022 = vmatprep.subr.bf16.mxu1 %v2925_v29  ;;  %v989_v35 = vld [vmem:[#allocation2] sm:$0xff] }
 0x2fa   :  { %v1176_v32 = vld [vmem:[#allocation2 + $0x2] sm:$0xff]  ;;  %v3562_v33 = vld [vmem:[#allocation2 + $0xa] sm:$0xff]  ;;  %2518 = vmatprep.mubr.f32.mxu0 %v989_v35 }
 0x2fb   :  { %1301 = vst [vmem:[#allocation2 + $0x9] sm:$0xff] %v1299_v28  ;;  %1300 = vst [vmem:[#allocation2 + $0x1] sm:$0xff] %v1298_v21 }
 0x2fc   :  { %2928 = vmatpush3.bf16.msra.mxu0 %v2925_v29  ;;  %3024 = vmatpush3.bf16.msra.mxu1 %v2925_v29 }
 0x2fd   :  { %2930 = vmatprep.subr.bf16.mxu0 %v2929_v34  ;;  %3026 = vmatprep.subr.bf16.mxu1 %v2929_v34 }
 0x300   :  { %2932 = vmatpush3.bf16.msra.mxu0 %v2929_v34  ;;  %3028 = vmatpush3.bf16.msra.mxu1 %v2929_v34 }
 0x301   :  { %2934 = vmatprep.subr.bf16.mxu0 %v2933_v38  ;;  %3030 = vmatprep.subr.bf16.mxu1 %v2933_v38 }
 0x302   :  { %v1302_v42 = vld [vmem:[#allocation2] sm:$0xff]  ;;  %v1303_v58 = vld [vmem:[#allocation2 + $0x8] sm:$0xff] }
 0x303   :  { %2623 = vmatprep.mubr.f32.mxu1 %v1302_v42  ;;  %v1488_v60 = vld [vmem:[#allocation2 + $0x2] sm:$0xff]  ;;  %v1489_v21 = vld [vmem:[#allocation2 + $0xa] sm:$0xff] }
 0x304   :  { %2936 = vmatpush3.bf16.msra.mxu0 %v2933_v38  ;;  %3032 = vmatpush3.bf16.msra.mxu1 %v2933_v38 }
 0x305   :  { %2938 = vmatprep.subr.bf16.mxu0 %v2937_v41  ;;  %3034 = vmatprep.subr.bf16.mxu1 %v2937_v41 }
 0x308   :  { %2940 = vmatpush3.bf16.msra.mxu0 %v2937_v41  ;;  %3036 = vmatpush3.bf16.msra.mxu1 %v2937_v41 }
 0x309   :  { %2942 = vmatprep.subr.bf16.mxu0 %v2941_v45  ;;  %3038 = vmatprep.subr.bf16.mxu1 %v2941_v45 }
 0x30c   :  { %2944 = vmatpush3.bf16.msra.mxu0 %v2941_v45  ;;  %3040 = vmatpush3.bf16.msra.mxu1 %v2941_v45 }
 0x30d   :  { %2946 = vmatprep.subr.bf16.mxu0 %v2945_v48  ;;  %3042 = vmatprep.subr.bf16.mxu1 %v2945_v48 }
 0x310   :  { %2948 = vmatpush3.bf16.msra.mxu0 %v2945_v48  ;;  %3044 = vmatpush3.bf16.msra.mxu1 %v2945_v48 }
 0x311   :  { %2950 = vmatprep.subr.bf16.mxu0 %v2949_v51  ;;  %3046 = vmatprep.subr.bf16.mxu1 %v2949_v51 }
 0x313   :  { %2519 = vmatmul.mubr.f32.vlgmr.msra.gmra.mrb[6].mxu0 %v990_v31  ;;  %2624 = vmatmul.mubr.f32.vlgmr.msra.gmra.mrb[6].mxu1 %v1303_v58 }
 0x314   :  { %2952 = vmatpush3.bf16.msra.mxu0 %v2949_v51  ;;  %2553 = vmatprep.mubr.f32.mxu0 %v1176_v32 }
 0x315   :  { %2954 = vmatprep.subr.bf16.mxu0 %v2953_v54  ;;  %3048 = vmatpush3.bf16.msra.mxu1 %v2949_v51 }
 0x316   :  { %2658 = vmatprep.mubr.f32.mxu1 %v1488_v60  ;;  %3050 = vmatprep.subr.bf16.mxu1 %v2953_v54 }
 0x318   :  { %2956 = vmatpush3.bf16.msra.mxu0 %v2953_v54 }
 0x319   :  { %2958 = vmatprep.subr.bf16.mxu0 %v2957_v59  ;;  %3052 = vmatpush3.bf16.msra.mxu1 %v2953_v54 }
 0x31a   :  { %3054 = vmatprep.subr.bf16.mxu1 %v2957_v59 }
 0x31c   :  { %2960 = vmatpush3.bf16.msra.mxu0 %v2957_v59 }
 0x31d   :  { %2962 = vmatprep.subr.bf16.mxu0 %v2961_v2  ;;  %3056 = vmatpush3.bf16.msra.mxu1 %v2957_v59 }
 0x31e   :  { %3058 = vmatprep.subr.bf16.mxu1 %v2961_v2 }
 0x320   :  { %2964 = vmatpush3.bf16.msra.mxu0 %v2961_v2 }
 0x321   :  { %2966 = vmatprep.subr.bf16.mxu0 %v2965_v6  ;;  %3060 = vmatpush3.bf16.msra.mxu1 %v2961_v2  ;;  %v1763_v2 = vld [vmem:[%s3657_s5] sm:$0x1]  ;;  %s3206_s5 = smov [#allocation6]  }
 0x322   :  { %3062 = vmatprep.subr.bf16.mxu1 %v2965_v6 }
 0x324   :  { %2968 = vmatpush3.bf16.msra.mxu0 %v2965_v6 }
 0x325   :  { %2970 = vmatprep.subr.bf16.mxu0 %v2969_v11  ;;  %3064 = vmatpush3.bf16.msra.mxu1 %v2965_v6 }
 0x326   :  { %3066 = vmatprep.subr.bf16.mxu1 %v2969_v11 }
 0x328   :  { %2972 = vmatpush3.bf16.msra.mxu0 %v2969_v11 }
 0x329   :  { %2974 = vmatprep.subr.bf16.mxu0 %v2973_v15  ;;  %3068 = vmatpush3.bf16.msra.mxu1 %v2969_v11 }
 0x32a   :  { %3070 = vmatprep.subr.bf16.mxu1 %v2973_v15 }
 0x32c   :  { %2976 = vmatpush3.bf16.msra.mxu0 %v2973_v15 }
 0x32d   :  { %2978 = vmatprep.subr.bf16.mxu0 %v2977_v20  ;;  %3072 = vmatpush3.bf16.msra.mxu1 %v2973_v15 }
 0x32e   :  { %3074 = vmatprep.subr.bf16.mxu1 %v2977_v20 }
 0x330   :  { %2980 = vmatpush3.bf16.msra.mxu0 %v2977_v20 }
 0x331   :  { %3076 = vmatpush3.bf16.msra.mxu1 %v2977_v20  ;;  %3077 = vmatprep.subr.bf16.mxu0 %v3203_v1 }
 0x332   :  { %3101 = vmatprep.subr.bf16.mxu1 %v3203_v1 }
 0x333   :  { %2554 = vmatmul.mubr.f32.vlgmr.msra.gmra.mrb[6].mxu0 %v3562_v33 }
 0x334   :  { %2659 = vmatmul.mubr.f32.vlgmr.msra.gmra.mrb[6].mxu1 %v1489_v21  ;;  %3079 = vmatpush3.bf16.msra.mxu0 %v3414_v0 }
 0x335   :  { %3103 = vmatpush3.bf16.msra.mxu1 %v3414_v0  ;;  %3080 = vmatprep.subr.bf16.mxu0 %v3203_v1 }
 0x336   :  { %3104 = vmatprep.subr.bf16.mxu1 %v3203_v1  ;;  %2693 = vmatprep.mubr.msk.f32.mxu0 %vm3204_vm3, %v3205_v23 }
 0x337   :  { %2728 = vmatprep.mubr.msk.f32.mxu1 %vm3204_vm3, %v3205_v23 }
 0x338   :  { %3082 = vmatpush3.bf16.msra.mxu0 %v3428_v4 }
 0x339   :  { %3106 = vmatpush3.bf16.msra.mxu1 %v3428_v4  ;;  %3083 = vmatprep.subr.bf16.mxu0 %v3203_v1 }
 0x33a   :  { %3107 = vmatprep.subr.bf16.mxu1 %v3203_v1 }
 0x33c   :  { %3085 = vmatpush3.bf16.msra.mxu0 %v3440_v7 }
 0x33d   :  { %3109 = vmatpush3.bf16.msra.mxu1 %v3440_v7  ;;  %3086 = vmatprep.subr.bf16.mxu0 %v3203_v1 }
 0x33e   :  { %3110 = vmatprep.subr.bf16.mxu1 %v3203_v1 }
 0x340   :  { %3088 = vmatpush3.bf16.msra.mxu0 %v3452_v10 }
 0x341   :  { %3112 = vmatpush3.bf16.msra.mxu1 %v3452_v10  ;;  %3089 = vmatprep.subr.bf16.mxu0 %v3203_v1 }
 0x342   :  { %3113 = vmatprep.subr.bf16.mxu1 %v3203_v1 }
 0x344   :  { %3091 = vmatpush3.bf16.msra.mxu0 %v3466_v13 }
 0x345   :  { %3115 = vmatpush3.bf16.msra.mxu1 %v3466_v13  ;;  %3092 = vmatprep.subr.bf16.mxu0 %v3203_v1 }
 0x346   :  { %3116 = vmatprep.subr.bf16.mxu1 %v3203_v1 }
 0x348   :  { %3094 = vmatpush3.bf16.msra.mxu0 %v3478_v16 }
 0x349   :  { %3118 = vmatpush3.bf16.msra.mxu1 %v3478_v16  ;;  %3095 = vmatprep.subr.bf16.mxu0 %v3203_v1 }
 0x34a   :  { %3119 = vmatprep.subr.bf16.mxu1 %v3203_v1 }
 0x34c   :  { %3097 = vmatpush3.bf16.msra.mxu0 %v3490_v19 }
 0x34d   :  { %3121 = vmatpush3.bf16.msra.mxu1 %v3490_v19  ;;  %3098 = vmatprep.subr.bf16.mxu0 %v3203_v1 }
 0x34e   :  { %3122 = vmatprep.subr.bf16.mxu1 %v3203_v1 }
 0x350   :  { %3100 = vmatpush3.bf16.msra.mxu0 %v3502_v22 }
 0x351   :  { %3124 = vmatpush3.bf16.msra.mxu1 %v3502_v22  ;;  %2731 = vmatprep.subr.mxu0 %v3205_v23 }
 0x352   :  { %2736 = vmatprep.subr.mxu1 %v3205_v23 }
 0x406   :  { %v3603_v0 = vpop.f32.mrb[6].mxu0 }
 0x407   :  { %v1283_v4 = vmul.f32 %v3603_v0, %v3603_v0  ;;  %v3607_v7 = vpop.f32.mrb[7].mxu0  ;;  %v3609_v10 = vpop.f32.mrb[6].mxu1 }
 0x408   :  { %v1274_v1 = vadd.f32 %v3603_v0, %v3607_v7  ;;  %v1282_v13 = vmul.f32 %v3607_v7, %v3607_v7  ;;  %v1594_v16 = vmul.f32 %v3609_v10, %v3609_v10  ;;  %v1572_v19 = vpop.f32.mrb[7].mxu1 }
 0x409   :  { %v1585_v22 = vadd.f32 %v3609_v10, %v1572_v19  ;;  %v1593_v28 = vmul.f32 %v1572_v19, %v1572_v19 }
 0x40a   :  { %v1275_v26 = vrot.slane %v1274_v1, 4  ;;  %v1284_v24 = vadd.f32 %v1283_v4, %v1282_v13 }
 0x40b   :  { %v1586_v25 = vrot.slane %v1585_v22, 4  ;;  %v1595_v29 = vadd.f32 %v1594_v16, %v1593_v28 }
 0x40c   :  { %v1276_v27 = vadd.f32 %v1275_v26, %v1274_v1  ;;  %v1285_v30 = vrot.slane %v1284_v24, 4 }
 0x40d   :  { %v1587_v31 = vadd.f32 %v1586_v25, %v1585_v22  ;;  %v1596_v32 = vrot.slane %v1595_v29, 4 }
 0x40e   :  { %v1277_v33 = vrot.slane %v1276_v27, 2  ;;  %v1286_v34 = vadd.f32 %v1285_v30, %v1284_v24 }
 0x40f   :  { %v1588_v35 = vrot.slane %v1587_v31, 2  ;;  %v1597_v36 = vadd.f32 %v1596_v32, %v1595_v29 }
 0x410   :  { %v1278_v37 = vadd.f32 %v1277_v33, %v1276_v27  ;;  %v1287_v38 = vrot.slane %v1286_v34, 2 }
 0x411   :  { %v1589_v39 = vadd.f32 %v1588_v35, %v1587_v31  ;;  %v1598_v40 = vrot.slane %v1597_v36, 2 }
 0x412   :  { %v1279_v41 = vrot.slane %v1278_v37, 1  ;;  %v1288_v42 = vadd.f32 %v1287_v38, %v1286_v34 }
 0x413   :  { %v1590_v43 = vrot.slane %v1589_v39, 1  ;;  %v1599_v44 = vadd.f32 %v1598_v40, %v1597_v36 }
 0x414   :  { %v1280_v45 = vadd.f32 %v1279_v41, %v1278_v37  ;;  %v1289_v46 = vrot.slane %v1288_v42, 1 }
 0x415   :  { %v1591_v47 = vadd.f32 %v1590_v43, %v1589_v39  ;;  %v1600_v48 = vrot.slane %v1599_v44, 1 }
 0x416   :  { %v1290_v49 = vadd.f32 %v1289_v46, %v1288_v42 }
 0x417   :  { %v1592_v50 = vadd.f32 %v1591_v47, %v1280_v45  ;;  %v1601_v51 = vadd.f32 %v1600_v48, %v1599_v44 }
 0x419   :  { %2694 = vmatmul.mubr.f32.vlgmr.msra.gmra.mrb[8].mxu0 %v1592_v50  ;;  %v1602_v52 = vadd.f32 %v1601_v51, %v1290_v49 }
 0x41a   :  { %2732 = vmatpush3.msra.mxu0 %v3542_v62  ;;  %2733 = vmatprep.mubr.msk.f32.mxu0 %vm3204_vm3, %v3205_v23 }
 0x41b   :  { %2729 = vmatmul.mubr.f32.vlgmr.msra.gmra.mrb[8].mxu1 %v1602_v52 }
 0x41c   :  { %2737 = vmatpush3.msra.mxu1 %v3542_v62  ;;  %2738 = vmatprep.mubr.msk.f32.mxu1 %vm3204_vm3, %v3205_v23  ;;  %v1767_v23 = vld [vmem:[%s3658_s6] sm:$0x1]  ;;  %s1950_s6 = sshll.u32 %s3206_s5, 4  ;;  %s1951_s6 = int_to_ptr.vmem [resolvable:$true] %s1950_s6 }
 0x41d   :  { %s3174_s13 = scalar_lea.vmem %s1951_s6, 512  ;;  %p3179_p9 = scmp.lt.s32.totalorder %s1951_s6, %s1951_s6 }
 0x41e   :  { %p3175_p8 = scmp.ne.s32.totalorder %s1951_s6, %s3174_s13  ;;  %p3180_p10 = scmp.lt.s32.totalorder %s3174_s13, %s3174_s13 }
 0x420   :  { %p3181_p11 = por %p3180_p10, %p3179_p9 }
 0x422   :  { %p3182_p12 = pnand %p3181_p11, %p3175_p8 }
 0x4ec   :  { %v1685_v53 = vpop.f32.mrb[8].mxu0 }
 0x4ed   :  { %v1759_v54 = vmul.f32 0.001953125, %v1685_v53  ;;  %v2695_v55 = vpop.f32.mrb[9].mxu0 }
 0x4ee   :  { %v1755_v56 = vpop.f32.mrb[8].mxu1 }
 0x4ef   :  { %v1761_v58 = vmul.f32 %v1759_v54, %v1759_v54  ;;  %v1760_v59 = vmul.f32 0.001953125, %v1755_v56  ;;  %v2730_v60 = vpop.f32.mrb[9].mxu1 }
 0x4f1   :  { %v1762_v61 = vsub.f32 %v1760_v59, %v1761_v58 }
 0x4f3   :  { %v1764_v63 = vadd.f32 1e-05, %v1762_v61 }
 0x4f5   :  { %3150 = vrsqrt.f32 %v1764_v63 }
 0x4ff   :  { %v3151_v3 = vpop.eup %3150 }
 0x500   :  { %v1766_v5 = vmul.f32 %v3151_v3, %v1763_v2 }
 0x502   :  { %2734 = vmatmul.mubr.msk.f32.vlgmr.msra.gmra.mrb[10].mxu0 %vm824_vm4, %v1766_v5  ;;  %v1768_v62 = vmul.f32 %v1766_v5, %v1759_v54 }
 0x504   :  { %v1769_v6 = vsub.f32 %v1767_v23, %v1768_v62 }
 0x506   :  { %2739 = vmatmul.mubr.msk.f32.vlgmr.msra.gmra.mrb[10].mxu1 %vm824_vm4, %v1769_v6 }
 0x5d5   :  { %v1840_v8 = vpop.f32.mrb[10].mxu0 }
 0x5d6   :  { %v1924_v9 = vrot.slane %v1840_v8, %v3554_v57  ;;  %v2735_v11 = vpop.f32.mrb[11].mxu0 }
 0x5d8   :  { %v1925_v12 = vmul.f32 %v1924_v9, %v3607_v7  ;;  %v1926_v14 = vmul.f32 %v3603_v0, %v1924_v9  ;;  %v1927_v15 = vmul.f32 %v1924_v9, %v1572_v19  ;;  %v1928_v17 = vmul.f32 %v3609_v10, %v1924_v9 }
 0x5d9   :  { %v1913_v18 = vpop.f32.mrb[10].mxu1 }
 0x5da   :  { %v1932_v20 = vrot.slane %v1913_v18, %v3554_v57  ;;  %v2740_v21 = vpop.f32.mrb[11].mxu1 }
 0x5dc   :  { %v1933_v4 = vadd.f32 %v1932_v20, %v1925_v12  ;;  %v1934_v1 = vadd.f32 %v1932_v20, %v1926_v14  ;;  %v1935_v13 = vadd.f32 %v1932_v20, %v1927_v15  ;;  %v1936_v16 = vadd.f32 %v1932_v20, %v1928_v17 }
 0x5de   :  { %v1937_v22 = vmax.f32 %v1933_v4, 0.0  ;;  %v1938_v28 = vmax.f32 %v1934_v1, 0.0  ;;  %v1939_v26 = vmax.f32 %v1935_v13, 0.0  ;;  %v1940_v24 = vmax.f32 %v1936_v16, 0.0 }
 0x5e0   :  { %1941 = vst [vmem:[#allocation6] sm:$0xff] %v1937_v22  ;;  %1942 = vst [vmem:[#allocation6 + $0x8] sm:$0xff] %v1938_v28 }
 0x5e1   :  { %1943 = vst [vmem:[#allocation6 + $0x10] sm:$0xff] %v1939_v26  ;;  %1944 = vst [vmem:[#allocation6 + $0x18] sm:$0xff] %v1940_v24 }
 0x5e2   :  { %3185 = shalt.err (!%p3182_p12)
}
 0x5e3   :  { %s3186_s16 = scalar_lea.hbm %s3661_s9, 512 }
 0x5e4   :  { %p3187_p13 = scmp.ne.s32.totalorder %s3661_s9, %s3186_s16  ;;  %p3190_p0 = scmp.lt.u32.totalorder %s3186_s16, %s3661_s9 }
 0x5e6   :  { %p3192_p1 = pnand %p3190_p0, %p3187_p13 }
 0x5e8   :  { %3195 = shalt.err (!%p3192_p1)
}
 0x5e9   :  { %1956 = dma.vmem_to_hbm [thread:$0]  %s1951_s6, 512, %s3661_s9, [#allocation5], %s3201_s19, %s3201_s19, %s3202_s20  }
 0x5ea   :  { %3198 = dma.done.wait [#allocation5], 512  }
 0x5eb   :  { %3199 = vsyncadd [#allocation5], 4294966784 }
 0x5ec   :  { %1960 = vsyncpa [#allocation4], 1 }
 0x5ed   :  { %1961 = vsyncpa [#allocation5], 1 }

</bundles_post_ra>
